<compile_context>
chip_gen: v6e
topology: v6e:2x2x1
jax: 0.10.0
libtpu: 0.0.40
codegen_flags: <defaults>
</compile_context>

<pallas_src>
from functools import partial

import jax
import jax.numpy as jnp
from jax.experimental import pallas as pl
from jax.experimental.pallas import tpu as pltpu


# ----------------------------------------------------------------------------
# Helpers
# ----------------------------------------------------------------------------
def _layernorm(x, g, b, eps=1e-5):
    m = jnp.mean(x, axis=-1, keepdims=True)
    v = jnp.mean((x - m) ** 2, axis=-1, keepdims=True)
    return (x - m) * jax.lax.rsqrt(v + eps) * g + b


# ----------------------------------------------------------------------------
# Kernel: one encoder layer, one (batch, query-tile) cell per grid step.
# ----------------------------------------------------------------------------
def encoder_layer_kernel(src_full_ref, src_q_ref, mask_ref,
                         ln1_g_ref, ln1_b_ref,
                         wq_ref, bq_ref, wkv_ref, bkv_ref,
                         wo_ref, bo_ref,
                         ln2_g_ref, ln2_b_ref,
                         w1_ref, b1_ref, w2_ref, b2_ref,
                         out_ref,
                         kv_ref,                     # VMEM scratch [S, 2H] bf16
                         *, n_heads, head_dim):
    S, H = src_full_ref.shape                        # block shapes (batch dim squeezed)
    TQ = src_q_ref.shape[0]
    qi = pl.program_id(1)

    # K/V projection for the whole sequence: computed once per batch element
    # (the query-tile axis is 'arbitrary', so qi runs sequentially per b and the
    # scratch is reused by the remaining query tiles of the same batch element).
    @pl.when(qi == 0)
    def _():
        kv = jnp.dot(src_full_ref[...].astype(jnp.bfloat16), wkv_ref[...],
                     preferred_element_type=jnp.float32) + bkv_ref[...]
        kv_ref[...] = kv.astype(jnp.bfloat16)

    src_q = src_q_ref[...]                           # [TQ, H] f32

    # Additive key-mask bias, broadcast ONCE (hoisted out of the head loop).
    key_mask = mask_ref[...]                         # [1, S] (0 => masked key)
    neg_bias = jnp.where(key_mask == 0.0, jnp.float32(-1e10), jnp.float32(0.0))
    neg_bias = jnp.broadcast_to(neg_bias, (TQ, S))

    # Q projection for this query tile.  1/sqrt(head_dim) is already folded into
    # wq AND bq at parameter-init time, so no per-step scaling multiply.
    q = jnp.dot(src_q.astype(jnp.bfloat16), wq_ref[...],
                preferred_element_type=jnp.float32) + bq_ref[...]
    q_bf = q.astype(jnp.bfloat16)

    kv = kv_ref[...]                                 # [S, 2H] bf16
    k_bf = kv[:, :H]
    v_bf = kv[:, H:]

    # ---- multi-head self-attention (heads statically unrolled) ------------
    ctx_heads = []
    for h in range(n_heads):
        sl = slice(h * head_dim, (h + 1) * head_dim)
        qh, kh, vh = q_bf[:, sl], k_bf[:, sl], v_bf[:, sl]   # [TQ|S, hd] bf16
        # q @ k^T with the transpose folded into the contraction.
        energy = jax.lax.dot_general(qh, kh, (((1,), (1,)), ((), ())),
                                     preferred_element_type=jnp.float32)  # [TQ, S]
        energy = energy + neg_bias
        m = jnp.max(energy, axis=-1, keepdims=True)
        p = jnp.exp(energy - m)
        # approx reciprocal runs on the EUP slot (~1e-3 rel err; inference only).
        inv_l = pl.reciprocal(jnp.sum(p, axis=-1, keepdims=True), approx=True)
        # Deferred normalization: scale the [TQ, hd] context, not the [TQ, S] p.
        ctx = jnp.dot(p.astype(jnp.bfloat16), vh,
                      preferred_element_type=jnp.float32)                 # [TQ, hd]
        ctx_heads.append(ctx * inv_l)

    # One fused output projection: [TQ, H] @ [H, H] (full-depth MXU contraction).
    ctx_all = jnp.concatenate(ctx_heads, axis=-1)                         # [TQ, H] f32
    attn_out = jnp.dot(ctx_all.astype(jnp.bfloat16), wo_ref[...],
                       preferred_element_type=jnp.float32) + bo_ref[...]

    # ---- residual + layernorm 1 (dropout = identity) -----------------------
    x = src_q + attn_out
    x = _layernorm(x, ln1_g_ref[...], ln1_b_ref[...])

    # ---- position-wise feed-forward (bf16 matmuls, f32 accumulate) ---------
    hdn = jnp.maximum(
        jnp.dot(x.astype(jnp.bfloat16), w1_ref[...],
                preferred_element_type=jnp.float32) + b1_ref[...], 0.0)
    ff = jnp.dot(hdn.astype(jnp.bfloat16), w2_ref[...],
                 preferred_element_type=jnp.float32) + b2_ref[...]

    # ---- residual + layernorm 2 ---------------------------------------------
    y = _layernorm(x + ff, ln2_g_ref[...], ln2_b_ref[...])
    out_ref[...] = y.astype(out_ref.dtype)


# ----------------------------------------------------------------------------
# pallas_call wrapper
# ----------------------------------------------------------------------------
def _pick_q_tile(S, q_tile):
    if q_tile is not None:
        assert S % q_tile == 0 and (q_tile % 8 == 0 or q_tile == S), \
            "q_tile must divide S and be a multiple of 8 (or equal S)"
        return q_tile
    for c in (256, 128, 64, 32, 16, 8):
        if S % c == 0:
            return c
    return S


def _vmem_capacity_bytes():
    try:
        return int(pltpu.get_tpu_info().vmem_capacity_bytes)
    except Exception:  # narrow fallback for environments without the query API
        return 64 * 1024 * 1024  # conservative (v7x physical VMEM)


def _vmem_limit_bytes(S, TQ, H, PF):
    bf, f4 = 2, 4
    weights = (H * H + 2 * H * H + H * H + H * PF + PF * H) * bf    # wq, wkv, wo, w1, w2
    smalls = (H + 2 * H + H + PF + H + 4 * H) * f4                  # biases + LN params
    io = 2 * (S * H + TQ * H + S + TQ * H) * f4                     # double-buffered blocks
    scratch = S * 2 * H * bf                                        # K/V cache
    work = (3 * TQ * S + 4 * TQ * H + 2 * S * H + TQ * PF + 6 * TQ * H) * f4
    est = int(2 * (2 * weights + 2 * smalls + io + scratch + work))  # ~2x headroom
    cap = int(0.75 * _vmem_capacity_bytes())   # leave room for compiler-internal scratch
    if est > cap:
        raise ValueError(
            f"estimated resident VMEM {est / 2**20:.1f} MiB exceeds the "
            f"{cap / 2**20:.1f} MiB budget; use a smaller q_tile or tile the FFN")
    return min(max(est, 16 * 1024 * 1024), cap)


def encoder_layer(src, mask3, p, *, n_heads, q_tile=None):
    """One encoder layer. src: [B, S, H] f32, mask3: [B, 1, S] f32 (0 => masked key)."""
    B, S, H = src.shape
    head_dim = H // n_heads
    PF = p["w1"].shape[1]
    TQ = _pick_q_tile(S, q_tile)
    NQ = S // TQ

    def const(shape):
        n = len(shape)
        # Constant block index across the grid -> no re-DMA between steps.
        return pl.BlockSpec(shape, lambda b, q, _n=n: (0,) * _n)

    in_specs = [
        pl.BlockSpec((None, S, H), lambda b, q: (b, 0, 0)),   # full src (for K/V)
        pl.BlockSpec((None, TQ, H), lambda b, q: (b, q, 0)),  # query tile of src
        pl.BlockSpec((None, 1, S), lambda b, q: (b, 0, 0)),   # key mask
        const((1, H)), const((1, H)),                         # ln1 gamma/beta
        const((H, H)), const((1, H)),                         # Wq (bf16, scale folded), bq
        const((H, 2 * H)), const((1, 2 * H)),                 # Wkv (bf16), bkv
        const((H, H)), const((1, H)),                         # Wo (bf16), bo
        const((1, H)), const((1, H)),                         # ln2 gamma/beta
        const((H, PF)), const((1, PF)),                       # W1 (bf16), b1
        const((PF, H)), const((1, H)),                        # W2 (bf16), b2
    ]

    kern = partial(encoder_layer_kernel, n_heads=n_heads, head_dim=head_dim)
    return pl.pallas_call(
        kern,
        out_shape=jax.ShapeDtypeStruct((B, S, H), jnp.float32),
        grid=(B, NQ),
        in_specs=in_specs,
        out_specs=pl.BlockSpec((None, TQ, H), lambda b, q: (b, q, 0)),
        scratch_shapes=[pltpu.VMEM((S, 2 * H), jnp.bfloat16)],
        compiler_params=pltpu.CompilerParams(
            dimension_semantics=("parallel", "arbitrary"),
            vmem_limit_bytes=_vmem_limit_bytes(S, TQ, H, PF)),
    )(src, src, mask3,
      p["ln1_g"], p["ln1_b"],
      p["wq"], p["bq"], p["wkv"], p["bkv"],
      p["wo"], p["bo"],
      p["ln2_g"], p["ln2_b"],
      p["w1"], p["b1"], p["w2"], p["b2"])


def encoder_forward(src_tokens, src_mask, params, *, n_heads, q_tile=None):
    """src_tokens: [B, S] int32, src_mask: [B, 1, 1, S] (1 = keep, 0 = pad)."""
    B, S = src_tokens.shape
    H = params["tok_emb"].shape[1]
    tok = params["tok_emb"][src_tokens]                    # gather glue stays in XLA
    pos = params["pos_emb"][jnp.arange(S)][None, :, :]     # [1, S, H]
    x = (tok * jnp.sqrt(jnp.float32(H)) + pos).astype(jnp.float32)   # dropout = identity
    mask3 = src_mask.reshape(B, 1, S).astype(jnp.float32)
    for lp in params["layers"]:
        x = encoder_layer(x, mask3, lp, n_heads=n_heads, q_tile=q_tile)
    return x


# ----------------------------------------------------------------------------
# Parameters (Linear weights stored [in, out]; K/V fused; matmul weights bf16;
# the 1/sqrt(head_dim) attention scale is folded into Wq AND bq at init time)
# ----------------------------------------------------------------------------
def init_params(key, *, vocab, max_len, H, PF, n_layers, n_heads):
    head_dim = H // n_heads
    inv_scale = jnp.float32(1.0) / jnp.sqrt(jnp.float32(head_dim))

    def nrm(k, shape, scale=0.02):
        return (scale * jax.random.normal(k, shape)).astype(jnp.float32)

    keys = jax.random.split(key, 2 + n_layers)
    params = {
        "tok_emb": nrm(keys[0], (vocab, H), 1.0),
        "pos_emb": nrm(keys[1], (max_len, H), 1.0),
        "layers": [],
    }
    for li in range(n_layers):
        ks = jax.random.split(keys[2 + li], 12)
        wq, wk, wv = nrm(ks[0], (H, H)), nrm(ks[1], (H, H)), nrm(ks[2], (H, H))
        bq, bk, bv = nrm(ks[6], (1, H)), nrm(ks[7], (1, H)), nrm(ks[8], (1, H))
        lp = {
            "ln1_g": jnp.ones((1, H), jnp.float32),
            "ln1_b": jnp.zeros((1, H), jnp.float32),
            # scale folded into BOTH the Q weights and the Q bias.
            "wq": (wq * inv_scale).astype(jnp.bfloat16),
            "bq": (bq * inv_scale).astype(jnp.float32),
            "wkv": jnp.concatenate([wk, wv], axis=1).astype(jnp.bfloat16),
            "bkv": jnp.concatenate([bk, bv], axis=1).astype(jnp.float32),
            "wo": nrm(ks[3], (H, H)).astype(jnp.bfloat16),
            "bo": nrm(ks[9], (1, H)),
            "ln2_g": jnp.ones((1, H), jnp.float32),
            "ln2_b": jnp.zeros((1, H), jnp.float32),
            "w1": nrm(ks[4], (H, PF)).astype(jnp.bfloat16),
            "b1": nrm(ks[10], (1, PF)),
            "w2": nrm(ks[5], (PF, H)).astype(jnp.bfloat16),
            "b2": nrm(ks[11], (1, H)),
        }
        params["layers"].append(lp)
    return params


# ----------------------------------------------------------------------------
# Pure-JAX reference (same params, same bf16 matmul discipline, scale folded
# into wq/bq exactly as PyTorch's energy / sqrt(head_dim) — mathematically
# identical to the original module in eval mode)
# ----------------------------------------------------------------------------
def _ln_ref(x, g, b, eps=1e-5):
    m = jnp.mean(x, axis=-1, keepdims=True)
    v = jnp.mean((x - m) ** 2, axis=-1, keepdims=True)
    return (x - m) * jax.lax.rsqrt(v + eps) * g + b


def _layer_reference(x, mask3, p, *, n_heads):
    B, S, H = x.shape
    hd = H // n_heads
    xb = x.astype(jnp.bfloat16)
    q = jnp.einsum("bse,ek->bsk", xb, p["wq"],
                   preferred_element_type=jnp.float32) + p["bq"]
    kv = jnp.einsum("bse,ek->bsk", xb, p["wkv"],
                    preferred_element_type=jnp.float32) + p["bkv"]
    k, v = kv[..., :H], kv[..., H:]

    def split(t):
        return t.reshape(B, S, n_heads, hd).transpose(0, 2, 1, 3).astype(jnp.bfloat16)

    qh, kh, vh = split(q), split(k), split(v)
    e = jnp.einsum("bhqd,bhkd->bhqk", qh, kh, preferred_element_type=jnp.float32)
    e = e + jnp.where(mask3 == 0, -1e10, 0.0)[:, :, None, :]
    a = jax.nn.softmax(e, axis=-1)
    ctx = jnp.einsum("bhqk,bhkd->bhqd", a.astype(jnp.bfloat16), vh,
                     preferred_element_type=jnp.float32)
    ctx = ctx.transpose(0, 2, 1, 3).reshape(B, S, H)
    attn_out = jnp.einsum("bse,ek->bsk", ctx.astype(jnp.bfloat16), p["wo"],
                          preferred_element_type=jnp.float32) + p["bo"]
    x1 = _ln_ref(x + attn_out, p["ln1_g"], p["ln1_b"])
    h1 = jnp.maximum(jnp.einsum("bse,ek->bsk", x1.astype(jnp.bfloat16), p["w1"],
                                preferred_element_type=jnp.float32) + p["b1"], 0.0)
    ff = jnp.einsum("bse,ek->bsk", h1.astype(jnp.bfloat16), p["w2"],
                    preferred_element_type=jnp.float32) + p["b2"]
    return _ln_ref(x1 + ff, p["ln2_g"], p["ln2_b"])


def encoder_forward_reference(src_tokens, src_mask, params, *, n_heads):
    B, S = src_tokens.shape
    H = params["tok_emb"].shape[1]
    tok = params["tok_emb"][src_tokens]
    pos = params["pos_emb"][jnp.arange(S)][None, :, :]
    x = (tok * jnp.sqrt(jnp.float32(H)) + pos).astype(jnp.float32)
    mask3 = src_mask.reshape(B, 1, S).astype(jnp.float32)
    for lp in params["layers"]:
        x = _layer_reference(x, mask3, lp, n_heads=n_heads)
    return x


if __name__ == "__main__":
    # Small, lane-dense config: hidden and pf_dim are multiples of 128.
    B, S, H, NH, PF, NL = 2, 16, 128, 4, 256, 2
    VOCAB, MAX_LEN = 50, 100

    key = jax.random.PRNGKey(0)
    k_param, k_tok = jax.random.split(key)
    params = init_params(k_param, vocab=VOCAB, max_len=MAX_LEN, H=H, PF=PF,
                         n_layers=NL, n_heads=NH)

    src_tokens = jax.random.randint(k_tok, (B, S), 0, VOCAB, dtype=jnp.int32)
    # standard pad mask [B, 1, 1, S]: mask out the last three positions of example 1
    src_mask = jnp.ones((B, 1, 1, S), jnp.float32)
    src_mask = src_mask.at[1, 0, 0, S - 3:].set(0.0)

    # q_tile=8 exercises the multi-tile query path (grid = (B, 2)).
    out = encoder_forward(src_tokens, src_mask, params, n_heads=NH, q_tile=8)
    out = jax.block_until_ready(out)
    assert out.shape == (B, S, H) and bool(jnp.all(jnp.isfinite(out)))

    ref = encoder_forward_reference(src_tokens, src_mask, params, n_heads=NH)
    err = float(jnp.max(jnp.abs(out - ref)))
    assert err < 5e-2, f"mismatch vs reference: {err}"

    print("KERNEL_OK")
</pallas_src>

<mosaic_0001>
module attributes {stable_mosaic.version = 11 : i64} {
  func.func @encoder_layer_kernel(%arg0: i32, %arg1: i32, %arg2: memref<1x16x128xf32, #tpu.memory_space<vmem>>, %arg3: memref<1x8x128xf32, #tpu.memory_space<vmem>>, %arg4: memref<1x1x16xf32, #tpu.memory_space<vmem>>, %arg5: memref<1x128xf32, #tpu.memory_space<vmem>>, %arg6: memref<1x128xf32, #tpu.memory_space<vmem>>, %arg7: memref<128x128xbf16, #tpu.memory_space<vmem>>, %arg8: memref<1x128xf32, #tpu.memory_space<vmem>>, %arg9: memref<128x256xbf16, #tpu.memory_space<vmem>>, %arg10: memref<1x256xf32, #tpu.memory_space<vmem>>, %arg11: memref<128x128xbf16, #tpu.memory_space<vmem>>, %arg12: memref<1x128xf32, #tpu.memory_space<vmem>>, %arg13: memref<1x128xf32, #tpu.memory_space<vmem>>, %arg14: memref<1x128xf32, #tpu.memory_space<vmem>>, %arg15: memref<128x256xbf16, #tpu.memory_space<vmem>>, %arg16: memref<1x256xf32, #tpu.memory_space<vmem>>, %arg17: memref<256x128xbf16, #tpu.memory_space<vmem>>, %arg18: memref<1x128xf32, #tpu.memory_space<vmem>>, %arg19: memref<1x8x128xf32, #tpu.memory_space<vmem>>, %arg20: memref<16x256xbf16, #tpu.memory_space<vmem>>) attributes {dimension_semantics = [#tpu.dimension_semantics<parallel>, #tpu.dimension_semantics<arbitrary>], iteration_bounds = array<i64: 2, 2>, scalar_prefetch = 0 : i64, scratch_operands = 1 : i64, tpu.core_type = #tpu.core_type<tc>, window_params = [{transform_indices = @transform_0, window_bounds = array<i64: 1, 16, 128>}, {transform_indices = @transform_1, window_bounds = array<i64: 1, 8, 128>}, {transform_indices = @transform_2, window_bounds = array<i64: 1, 1, 16>}, {pipeline_mode = #tpu.pipeline_mode<synchronous>, transform_indices = @transform_3, window_bounds = array<i64: 1, 128>}, {pipeline_mode = #tpu.pipeline_mode<synchronous>, transform_indices = @transform_4, window_bounds = array<i64: 1, 128>}, {pipeline_mode = #tpu.pipeline_mode<synchronous>, transform_indices = @transform_5, window_bounds = array<i64: 128, 128>}, {pipeline_mode = #tpu.pipeline_mode<synchronous>, transform_indices = @transform_6, window_bounds = array<i64: 1, 128>}, {pipeline_mode = #tpu.pipeline_mode<synchronous>, transform_indices = @transform_7, window_bounds = array<i64: 128, 256>}, {pipeline_mode = #tpu.pipeline_mode<synchronous>, transform_indices = @transform_8, window_bounds = array<i64: 1, 256>}, {pipeline_mode = #tpu.pipeline_mode<synchronous>, transform_indices = @transform_9, window_bounds = array<i64: 128, 128>}, {pipeline_mode = #tpu.pipeline_mode<synchronous>, transform_indices = @transform_10, window_bounds = array<i64: 1, 128>}, {pipeline_mode = #tpu.pipeline_mode<synchronous>, transform_indices = @transform_11, window_bounds = array<i64: 1, 128>}, {pipeline_mode = #tpu.pipeline_mode<synchronous>, transform_indices = @transform_12, window_bounds = array<i64: 1, 128>}, {pipeline_mode = #tpu.pipeline_mode<synchronous>, transform_indices = @transform_13, window_bounds = array<i64: 128, 256>}, {pipeline_mode = #tpu.pipeline_mode<synchronous>, transform_indices = @transform_14, window_bounds = array<i64: 1, 256>}, {pipeline_mode = #tpu.pipeline_mode<synchronous>, transform_indices = @transform_15, window_bounds = array<i64: 256, 128>}, {pipeline_mode = #tpu.pipeline_mode<synchronous>, transform_indices = @transform_16, window_bounds = array<i64: 1, 128>}, {transform_indices = @transform_17, window_bounds = array<i64: 1, 8, 128>}]} {
    %c0_i32 = arith.constant 0 : i32
    %0 = arith.cmpi eq, %arg1, %c0_i32 : i32
    %1 = arith.extui %0 : i1 to i32
    %c0_i32_0 = arith.constant 0 : i32
    %2 = arith.cmpi ne, %1, %c0_i32_0 : i32
    scf.if %2 {
      %c0_68 = arith.constant 0 : index
      %c0_69 = arith.constant 0 : index
      %c0_70 = arith.constant 0 : index
      %166 = vector.load %arg2[%c0_68, %c0_69, %c0_70] : memref<1x16x128xf32, #tpu.memory_space<vmem>>, vector<1x16x128xf32>
      %167 = vector.shape_cast %166 : vector<1x16x128xf32> to vector<16x128xf32>
      %168 = arith.truncf %167 : vector<16x128xf32> to vector<16x128xbf16>
      %c0_71 = arith.constant 0 : index
      %c0_72 = arith.constant 0 : index
      %169 = vector.load %arg9[%c0_71, %c0_72] : memref<128x256xbf16, #tpu.memory_space<vmem>>, vector<128x256xbf16>
      %cst_73 = arith.constant dense<0.000000e+00> : vector<16x256xf32>
      %170 = tpu.matmul %168, %169, %cst_73 {dimension_numbers = #tpu.dot_dimension_numbers<[1], [0], [0], [1], [0, 0, 1, 1], [], []>} : vector<16x128xbf16>, vector<128x256xbf16>, vector<16x256xf32> -> vector<16x256xf32>
      %c0_74 = arith.constant 0 : index
      %c0_75 = arith.constant 0 : index
      %171 = vector.load %arg10[%c0_74, %c0_75] : memref<1x256xf32, #tpu.memory_space<vmem>>, vector<1x256xf32>
      %172 = vector.broadcast %171 : vector<1x256xf32> to vector<16x256xf32>
      %173 = arith.addf %170, %172 : vector<16x256xf32>
      %174 = arith.truncf %173 : vector<16x256xf32> to vector<16x256xbf16>
      %c0_76 = arith.constant 0 : index
      %c0_77 = arith.constant 0 : index
      %175 = vector.load %arg20[%c0_76, %c0_77] : memref<16x256xbf16, #tpu.memory_space<vmem>>, vector<16x256xbf16>
      tpu.vector_store %arg20[%c0_76, %c0_77], %174 {strides = array<i32>} : memref<16x256xbf16, #tpu.memory_space<vmem>>, vector<16x256xbf16>,
    } else {
    }
    %c0 = arith.constant 0 : index
    %c0_1 = arith.constant 0 : index
    %c0_2 = arith.constant 0 : index
    %3 = vector.load %arg3[%c0, %c0_1, %c0_2] : memref<1x8x128xf32, #tpu.memory_space<vmem>>, vector<1x8x128xf32>
    %4 = vector.shape_cast %3 : vector<1x8x128xf32> to vector<8x128xf32>
    %c0_3 = arith.constant 0 : index
    %c0_4 = arith.constant 0 : index
    %c0_5 = arith.constant 0 : index
    %5 = vector.load %arg4[%c0_3, %c0_4, %c0_5] : memref<1x1x16xf32, #tpu.memory_space<vmem>>, vector<1x1x16xf32>
    %6 = vector.shape_cast %5 : vector<1x1x16xf32> to vector<1x16xf32>
    %cst = arith.constant 0.000000e+00 : f32
    %7 = vector.broadcast %cst : f32 to vector<1x16xf32>
    %8 = arith.cmpf oeq, %6, %7 : vector<1x16xf32>
    %cst_6 = arith.constant -1.000000e+10 : f32
    %cst_7 = arith.constant 0.000000e+00 : f32
    %9 = vector.broadcast %cst_6 : f32 to vector<1x16xf32>
    %10 = vector.broadcast %cst_7 : f32 to vector<1x16xf32>
    %11 = arith.select %8, %9, %10 : vector<1x16xi1>, vector<1x16xf32>
    %12 = vector.shape_cast %11 : vector<1x16xf32> to vector<1x16xf32>
    %13 = vector.broadcast %12 : vector<1x16xf32> to vector<8x16xf32>
    %14 = arith.truncf %4 : vector<8x128xf32> to vector<8x128xbf16>
    %c0_8 = arith.constant 0 : index
    %c0_9 = arith.constant 0 : index
    %15 = vector.load %arg7[%c0_8, %c0_9] : memref<128x128xbf16, #tpu.memory_space<vmem>>, vector<128x128xbf16>
    %cst_10 = arith.constant dense<0.000000e+00> : vector<8x128xf32>
    %16 = tpu.matmul %14, %15, %cst_10 {dimension_numbers = #tpu.dot_dimension_numbers<[1], [0], [0], [1], [0, 0, 1, 1], [], []>} : vector<8x128xbf16>, vector<128x128xbf16>, vector<8x128xf32> -> vector<8x128xf32>
    %c0_11 = arith.constant 0 : index
    %c0_12 = arith.constant 0 : index
    %17 = vector.load %arg8[%c0_11, %c0_12] : memref<1x128xf32, #tpu.memory_space<vmem>>, vector<1x128xf32>
    %18 = vector.broadcast %17 : vector<1x128xf32> to vector<8x128xf32>
    %19 = arith.addf %16, %18 : vector<8x128xf32>
    %20 = arith.truncf %19 : vector<8x128xf32> to vector<8x128xbf16>
    %c0_13 = arith.constant 0 : index
    %c0_14 = arith.constant 0 : index
    %21 = vector.load %arg20[%c0_13, %c0_14] : memref<16x256xbf16, #tpu.memory_space<vmem>>, vector<16x256xbf16>
    %22 = vector.extract_strided_slice %21 {offsets = [0, 0], sizes = [16, 128], strides = [1, 1]} : vector<16x256xbf16> to vector<16x128xbf16>
    %23 = vector.extract_strided_slice %21 {offsets = [0, 128], sizes = [16, 128], strides = [1, 1]} : vector<16x256xbf16> to vector<16x128xbf16>
    %24 = vector.extract_strided_slice %20 {offsets = [0, 0], sizes = [8, 32], strides = [1, 1]} : vector<8x128xbf16> to vector<8x32xbf16>
    %25 = vector.extract_strided_slice %22 {offsets = [0, 0], sizes = [16, 32], strides = [1, 1]} : vector<16x128xbf16> to vector<16x32xbf16>
    %26 = vector.extract_strided_slice %23 {offsets = [0, 0], sizes = [16, 32], strides = [1, 1]} : vector<16x128xbf16> to vector<16x32xbf16>
    %cst_15 = arith.constant dense<0.000000e+00> : vector<8x16xf32>
    %27 = tpu.matmul %24, %25, %cst_15 {dimension_numbers = #tpu.dot_dimension_numbers<[1], [1], [0], [0], [0, 0, 1, 0], [], []>} : vector<8x32xbf16>, vector<16x32xbf16>, vector<8x16xf32> -> vector<8x16xf32>
    %28 = arith.addf %27, %13 : vector<8x16xf32>
    %cst_16 = arith.constant dense<0xFF800000> : vector<8xf32>
    %29 = vector.multi_reduction <maximumf>, %28, %cst_16 [1] : vector<8x16xf32> to vector<8xf32>
    %30 = vector.shape_cast %29 : vector<8xf32> to vector<8x1xf32>
    %31 = vector.broadcast %30 : vector<8x1xf32> to vector<8x16xf32>
    %32 = arith.subf %28, %31 : vector<8x16xf32>
    %33 = math.exp %32 : vector<8x16xf32>
    %cst_17 = arith.constant dense<0.000000e+00> : vector<8xf32>
    %34 = vector.multi_reduction <add>, %33, %cst_17 [1] : vector<8x16xf32> to vector<8xf32>
    %35 = vector.shape_cast %34 : vector<8xf32> to vector<8x1xf32>
    %36 = tpu.reciprocal %35 {approx = true} : vector<8x1xf32> -> vector<8x1xf32>
    %37 = arith.truncf %33 : vector<8x16xf32> to vector<8x16xbf16>
    %cst_18 = arith.constant dense<0.000000e+00> : vector<8x32xf32>
    %38 = tpu.matmul %37, %26, %cst_18 {dimension_numbers = #tpu.dot_dimension_numbers<[1], [0], [0], [1], [0, 0, 1, 1], [], []>} : vector<8x16xbf16>, vector<16x32xbf16>, vector<8x32xf32> -> vector<8x32xf32>
    %39 = vector.broadcast %36 : vector<8x1xf32> to vector<8x32xf32>
    %40 = arith.mulf %38, %39 : vector<8x32xf32>
    %41 = vector.extract_strided_slice %20 {offsets = [0, 32], sizes = [8, 32], strides = [1, 1]} : vector<8x128xbf16> to vector<8x32xbf16>
    %42 = vector.extract_strided_slice %22 {offsets = [0, 32], sizes = [16, 32], strides = [1, 1]} : vector<16x128xbf16> to vector<16x32xbf16>
    %43 = vector.extract_strided_slice %23 {offsets = [0, 32], sizes = [16, 32], strides = [1, 1]} : vector<16x128xbf16> to vector<16x32xbf16>
    %cst_19 = arith.constant dense<0.000000e+00> : vector<8x16xf32>
    %44 = tpu.matmul %41, %42, %cst_19 {dimension_numbers = #tpu.dot_dimension_numbers<[1], [1], [0], [0], [0, 0, 1, 0], [], []>} : vector<8x32xbf16>, vector<16x32xbf16>, vector<8x16xf32> -> vector<8x16xf32>
    %45 = arith.addf %44, %13 : vector<8x16xf32>
    %cst_20 = arith.constant dense<0xFF800000> : vector<8xf32>
    %46 = vector.multi_reduction <maximumf>, %45, %cst_20 [1] : vector<8x16xf32> to vector<8xf32>
    %47 = vector.shape_cast %46 : vector<8xf32> to vector<8x1xf32>
    %48 = vector.broadcast %47 : vector<8x1xf32> to vector<8x16xf32>
    %49 = arith.subf %45, %48 : vector<8x16xf32>
    %50 = math.exp %49 : vector<8x16xf32>
    %cst_21 = arith.constant dense<0.000000e+00> : vector<8xf32>
    %51 = vector.multi_reduction <add>, %50, %cst_21 [1] : vector<8x16xf32> to vector<8xf32>
    %52 = vector.shape_cast %51 : vector<8xf32> to vector<8x1xf32>
    %53 = tpu.reciprocal %52 {approx = true} : vector<8x1xf32> -> vector<8x1xf32>
    %54 = arith.truncf %50 : vector<8x16xf32> to vector<8x16xbf16>
    %cst_22 = arith.constant dense<0.000000e+00> : vector<8x32xf32>
    %55 = tpu.matmul %54, %43, %cst_22 {dimension_numbers = #tpu.dot_dimension_numbers<[1], [0], [0], [1], [0, 0, 1, 1], [], []>} : vector<8x16xbf16>, vector<16x32xbf16>, vector<8x32xf32> -> vector<8x32xf32>
    %56 = vector.broadcast %53 : vector<8x1xf32> to vector<8x32xf32>
    %57 = arith.mulf %55, %56 : vector<8x32xf32>
    %58 = vector.extract_strided_slice %20 {offsets = [0, 64], sizes = [8, 32], strides = [1, 1]} : vector<8x128xbf16> to vector<8x32xbf16>
    %59 = vector.extract_strided_slice %22 {offsets = [0, 64], sizes = [16, 32], strides = [1, 1]} : vector<16x128xbf16> to vector<16x32xbf16>
    %60 = vector.extract_strided_slice %23 {offsets = [0, 64], sizes = [16, 32], strides = [1, 1]} : vector<16x128xbf16> to vector<16x32xbf16>
    %cst_23 = arith.constant dense<0.000000e+00> : vector<8x16xf32>
    %61 = tpu.matmul %58, %59, %cst_23 {dimension_numbers = #tpu.dot_dimension_numbers<[1], [1], [0], [0], [0, 0, 1, 0], [], []>} : vector<8x32xbf16>, vector<16x32xbf16>, vector<8x16xf32> -> vector<8x16xf32>
    %62 = arith.addf %61, %13 : vector<8x16xf32>
    %cst_24 = arith.constant dense<0xFF800000> : vector<8xf32>
    %63 = vector.multi_reduction <maximumf>, %62, %cst_24 [1] : vector<8x16xf32> to vector<8xf32>
    %64 = vector.shape_cast %63 : vector<8xf32> to vector<8x1xf32>
    %65 = vector.broadcast %64 : vector<8x1xf32> to vector<8x16xf32>
    %66 = arith.subf %62, %65 : vector<8x16xf32>
    %67 = math.exp %66 : vector<8x16xf32>
    %cst_25 = arith.constant dense<0.000000e+00> : vector<8xf32>
    %68 = vector.multi_reduction <add>, %67, %cst_25 [1] : vector<8x16xf32> to vector<8xf32>
    %69 = vector.shape_cast %68 : vector<8xf32> to vector<8x1xf32>
    %70 = tpu.reciprocal %69 {approx = true} : vector<8x1xf32> -> vector<8x1xf32>
    %71 = arith.truncf %67 : vector<8x16xf32> to vector<8x16xbf16>
    %cst_26 = arith.constant dense<0.000000e+00> : vector<8x32xf32>
    %72 = tpu.matmul %71, %60, %cst_26 {dimension_numbers = #tpu.dot_dimension_numbers<[1], [0], [0], [1], [0, 0, 1, 1], [], []>} : vector<8x16xbf16>, vector<16x32xbf16>, vector<8x32xf32> -> vector<8x32xf32>
    %73 = vector.broadcast %70 : vector<8x1xf32> to vector<8x32xf32>
    %74 = arith.mulf %72, %73 : vector<8x32xf32>
    %75 = vector.extract_strided_slice %20 {offsets = [0, 96], sizes = [8, 32], strides = [1, 1]} : vector<8x128xbf16> to vector<8x32xbf16>
    %76 = vector.extract_strided_slice %22 {offsets = [0, 96], sizes = [16, 32], strides = [1, 1]} : vector<16x128xbf16> to vector<16x32xbf16>
    %77 = vector.extract_strided_slice %23 {offsets = [0, 96], sizes = [16, 32], strides = [1, 1]} : vector<16x128xbf16> to vector<16x32xbf16>
    %cst_27 = arith.constant dense<0.000000e+00> : vector<8x16xf32>
    %78 = tpu.matmul %75, %76, %cst_27 {dimension_numbers = #tpu.dot_dimension_numbers<[1], [1], [0], [0], [0, 0, 1, 0], [], []>} : vector<8x32xbf16>, vector<16x32xbf16>, vector<8x16xf32> -> vector<8x16xf32>
    %79 = arith.addf %78, %13 : vector<8x16xf32>
    %cst_28 = arith.constant dense<0xFF800000> : vector<8xf32>
    %80 = vector.multi_reduction <maximumf>, %79, %cst_28 [1] : vector<8x16xf32> to vector<8xf32>
    %81 = vector.shape_cast %80 : vector<8xf32> to vector<8x1xf32>
    %82 = vector.broadcast %81 : vector<8x1xf32> to vector<8x16xf32>
    %83 = arith.subf %79, %82 : vector<8x16xf32>
    %84 = math.exp %83 : vector<8x16xf32>
    %cst_29 = arith.constant dense<0.000000e+00> : vector<8xf32>
    %85 = vector.multi_reduction <add>, %84, %cst_29 [1] : vector<8x16xf32> to vector<8xf32>
    %86 = vector.shape_cast %85 : vector<8xf32> to vector<8x1xf32>
    %87 = tpu.reciprocal %86 {approx = true} : vector<8x1xf32> -> vector<8x1xf32>
    %88 = arith.truncf %84 : vector<8x16xf32> to vector<8x16xbf16>
    %cst_30 = arith.constant dense<0.000000e+00> : vector<8x32xf32>
    %89 = tpu.matmul %88, %77, %cst_30 {dimension_numbers = #tpu.dot_dimension_numbers<[1], [0], [0], [1], [0, 0, 1, 1], [], []>} : vector<8x16xbf16>, vector<16x32xbf16>, vector<8x32xf32> -> vector<8x32xf32>
    %90 = vector.broadcast %87 : vector<8x1xf32> to vector<8x32xf32>
    %91 = arith.mulf %89, %90 : vector<8x32xf32>
    %92 = tpu.concatenate %40, %57, %74, %91 in 1 : vector<8x32xf32>, vector<8x32xf32>, vector<8x32xf32>, vector<8x32xf32> -> vector<8x128xf32>
    %93 = arith.truncf %92 : vector<8x128xf32> to vector<8x128xbf16>
    %c0_31 = arith.constant 0 : index
    %c0_32 = arith.constant 0 : index
    %94 = vector.load %arg11[%c0_31, %c0_32] : memref<128x128xbf16, #tpu.memory_space<vmem>>, vector<128x128xbf16>
    %cst_33 = arith.constant dense<0.000000e+00> : vector<8x128xf32>
    %95 = tpu.matmul %93, %94, %cst_33 {dimension_numbers = #tpu.dot_dimension_numbers<[1], [0], [0], [1], [0, 0, 1, 1], [], []>} : vector<8x128xbf16>, vector<128x128xbf16>, vector<8x128xf32> -> vector<8x128xf32>
    %c0_34 = arith.constant 0 : index
    %c0_35 = arith.constant 0 : index
    %96 = vector.load %arg12[%c0_34, %c0_35] : memref<1x128xf32, #tpu.memory_space<vmem>>, vector<1x128xf32>
    %97 = vector.broadcast %96 : vector<1x128xf32> to vector<8x128xf32>
    %98 = arith.addf %95, %97 : vector<8x128xf32>
    %99 = arith.addf %4, %98 : vector<8x128xf32>
    %c0_36 = arith.constant 0 : index
    %c0_37 = arith.constant 0 : index
    %100 = vector.load %arg5[%c0_36, %c0_37] : memref<1x128xf32, #tpu.memory_space<vmem>>, vector<1x128xf32>
    %c0_38 = arith.constant 0 : index
    %c0_39 = arith.constant 0 : index
    %101 = vector.load %arg6[%c0_38, %c0_39] : memref<1x128xf32, #tpu.memory_space<vmem>>, vector<1x128xf32>
    %cst_40 = arith.constant dense<0.000000e+00> : vector<8xf32>
    %102 = vector.multi_reduction <add>, %99, %cst_40 [1] : vector<8x128xf32> to vector<8xf32>
    %103 = vector.shape_cast %102 : vector<8xf32> to vector<8x1xf32>
    %cst_41 = arith.constant 1.280000e+02 : f32
    %104 = vector.broadcast %cst_41 : f32 to vector<8x1xf32>
    %105 = arith.divf %103, %104 : vector<8x1xf32>
    %106 = vector.broadcast %105 : vector<8x1xf32> to vector<8x128xf32>
    %107 = arith.subf %99, %106 : vector<8x128xf32>
    %108 = arith.mulf %107, %107 : vector<8x128xf32>
    %cst_42 = arith.constant dense<0.000000e+00> : vector<8xf32>
    %109 = vector.multi_reduction <add>, %108, %cst_42 [1] : vector<8x128xf32> to vector<8xf32>
    %110 = vector.shape_cast %109 : vector<8xf32> to vector<8x1xf32>
    %cst_43 = arith.constant 1.280000e+02 : f32
    %111 = vector.broadcast %cst_43 : f32 to vector<8x1xf32>
    %112 = arith.divf %110, %111 : vector<8x1xf32>
    %113 = vector.broadcast %105 : vector<8x1xf32> to vector<8x128xf32>
    %114 = arith.subf %99, %113 : vector<8x128xf32>
    %cst_44 = arith.constant 9.99999974E-6 : f32
    %115 = vector.broadcast %cst_44 : f32 to vector<8x1xf32>
    %116 = arith.addf %112, %115 : vector<8x1xf32>
    %117 = math.rsqrt %116 : vector<8x1xf32>
    %118 = vector.broadcast %117 : vector<8x1xf32> to vector<8x128xf32>
    %119 = arith.mulf %114, %118 : vector<8x128xf32>
    %120 = vector.broadcast %100 : vector<1x128xf32> to vector<8x128xf32>
    %121 = arith.mulf %119, %120 : vector<8x128xf32>
    %122 = vector.broadcast %101 : vector<1x128xf32> to vector<8x128xf32>
    %123 = arith.addf %121, %122 : vector<8x128xf32>
    %124 = arith.truncf %123 : vector<8x128xf32> to vector<8x128xbf16>
    %c0_45 = arith.constant 0 : index
    %c0_46 = arith.constant 0 : index
    %125 = vector.load %arg15[%c0_45, %c0_46] : memref<128x256xbf16, #tpu.memory_space<vmem>>, vector<128x256xbf16>
    %cst_47 = arith.constant dense<0.000000e+00> : vector<8x256xf32>
    %126 = tpu.matmul %124, %125, %cst_47 {dimension_numbers = #tpu.dot_dimension_numbers<[1], [0], [0], [1], [0, 0, 1, 1], [], []>} : vector<8x128xbf16>, vector<128x256xbf16>, vector<8x256xf32> -> vector<8x256xf32>
    %c0_48 = arith.constant 0 : index
    %c0_49 = arith.constant 0 : index
    %127 = vector.load %arg16[%c0_48, %c0_49] : memref<1x256xf32, #tpu.memory_space<vmem>>, vector<1x256xf32>
    %128 = vector.broadcast %127 : vector<1x256xf32> to vector<8x256xf32>
    %129 = arith.addf %126, %128 : vector<8x256xf32>
    %cst_50 = arith.constant 0.000000e+00 : f32
    %130 = vector.broadcast %cst_50 : f32 to vector<8x256xf32>
    %131 = arith.maximumf %129, %130 : vector<8x256xf32>
    %132 = arith.truncf %131 : vector<8x256xf32> to vector<8x256xbf16>
    %c0_51 = arith.constant 0 : index
    %c0_52 = arith.constant 0 : index
    %133 = vector.load %arg17[%c0_51, %c0_52] : memref<256x128xbf16, #tpu.memory_space<vmem>>, vector<256x128xbf16>
    %cst_53 = arith.constant dense<0.000000e+00> : vector<8x128xf32>
    %134 = tpu.matmul %132, %133, %cst_53 {dimension_numbers = #tpu.dot_dimension_numbers<[1], [0], [0], [1], [0, 0, 1, 1], [], []>} : vector<8x256xbf16>, vector<256x128xbf16>, vector<8x128xf32> -> vector<8x128xf32>
    %c0_54 = arith.constant 0 : index
    %c0_55 = arith.constant 0 : index
    %135 = vector.load %arg18[%c0_54, %c0_55] : memref<1x128xf32, #tpu.memory_space<vmem>>, vector<1x128xf32>
    %136 = vector.broadcast %135 : vector<1x128xf32> to vector<8x128xf32>
    %137 = arith.addf %134, %136 : vector<8x128xf32>
    %138 = arith.addf %123, %137 : vector<8x128xf32>
    %c0_56 = arith.constant 0 : index
    %c0_57 = arith.constant 0 : index
    %139 = vector.load %arg13[%c0_56, %c0_57] : memref<1x128xf32, #tpu.memory_space<vmem>>, vector<1x128xf32>
    %c0_58 = arith.constant 0 : index
    %c0_59 = arith.constant 0 : index
    %140 = vector.load %arg14[%c0_58, %c0_59] : memref<1x128xf32, #tpu.memory_space<vmem>>, vector<1x128xf32>
    %cst_60 = arith.constant dense<0.000000e+00> : vector<8xf32>
    %141 = vector.multi_reduction <add>, %138, %cst_60 [1] : vector<8x128xf32> to vector<8xf32>
    %142 = vector.shape_cast %141 : vector<8xf32> to vector<8x1xf32>
    %cst_61 = arith.constant 1.280000e+02 : f32
    %143 = vector.broadcast %cst_61 : f32 to vector<8x1xf32>
    %144 = arith.divf %142, %143 : vector<8x1xf32>
    %145 = vector.broadcast %144 : vector<8x1xf32> to vector<8x128xf32>
    %146 = arith.subf %138, %145 : vector<8x128xf32>
    %147 = arith.mulf %146, %146 : vector<8x128xf32>
    %cst_62 = arith.constant dense<0.000000e+00> : vector<8xf32>
    %148 = vector.multi_reduction <add>, %147, %cst_62 [1] : vector<8x128xf32> to vector<8xf32>
    %149 = vector.shape_cast %148 : vector<8xf32> to vector<8x1xf32>
    %cst_63 = arith.constant 1.280000e+02 : f32
    %150 = vector.broadcast %cst_63 : f32 to vector<8x1xf32>
    %151 = arith.divf %149, %150 : vector<8x1xf32>
    %152 = vector.broadcast %144 : vector<8x1xf32> to vector<8x128xf32>
    %153 = arith.subf %138, %152 : vector<8x128xf32>
    %cst_64 = arith.constant 9.99999974E-6 : f32
    %154 = vector.broadcast %cst_64 : f32 to vector<8x1xf32>
    %155 = arith.addf %151, %154 : vector<8x1xf32>
    %156 = math.rsqrt %155 : vector<8x1xf32>
    %157 = vector.broadcast %156 : vector<8x1xf32> to vector<8x128xf32>
    %158 = arith.mulf %153, %157 : vector<8x128xf32>
    %159 = vector.broadcast %139 : vector<1x128xf32> to vector<8x128xf32>
    %160 = arith.mulf %158, %159 : vector<8x128xf32>
    %161 = vector.broadcast %140 : vector<1x128xf32> to vector<8x128xf32>
    %162 = arith.addf %160, %161 : vector<8x128xf32>
    %c0_65 = arith.constant 0 : index
    %c0_66 = arith.constant 0 : index
    %c0_67 = arith.constant 0 : index
    %163 = vector.load %arg19[%c0_65, %c0_66, %c0_67] : memref<1x8x128xf32, #tpu.memory_space<vmem>>, vector<1x8x128xf32>
    %164 = vector.shape_cast %163 : vector<1x8x128xf32> to vector<8x128xf32>
    %165 = vector.shape_cast %162 : vector<8x128xf32> to vector<1x8x128xf32>
    tpu.vector_store %arg19[%c0_65, %c0_66, %c0_67], %165 {strides = array<i32>} : memref<1x8x128xf32, #tpu.memory_space<vmem>>, vector<1x8x128xf32>,
    return
  }
  func.func @transform_0(%arg0: i32, %arg1: i32) -> (i32, i32, i32) {
    %c0_i32 = arith.constant 0 : i32
    %c0_i32_0 = arith.constant 0 : i32
    %c0_i32_1 = arith.constant 0 : i32
    return %arg0, %c0_i32, %c0_i32_0 : i32, i32, i32
  }
  func.func @transform_1(%arg0: i32, %arg1: i32) -> (i32, i32, i32) {
    %c0_i32 = arith.constant 0 : i32
    %c0_i32_0 = arith.constant 0 : i32
    return %arg0, %arg1, %c0_i32 : i32, i32, i32
  }
  func.func @transform_2(%arg0: i32, %arg1: i32) -> (i32, i32, i32) {
    %c0_i32 = arith.constant 0 : i32
    %c0_i32_0 = arith.constant 0 : i32
    %c0_i32_1 = arith.constant 0 : i32
    return %arg0, %c0_i32, %c0_i32_0 : i32, i32, i32
  }
  func.func @transform_3(%arg0: i32, %arg1: i32) -> (i32, i32) {
    %c0_i32 = arith.constant 0 : i32
    %c0_i32_0 = arith.constant 0 : i32
    %c0_i32_1 = arith.constant 0 : i32
    return %c0_i32, %c0_i32_0 : i32, i32
  }
  func.func @transform_4(%arg0: i32, %arg1: i32) -> (i32, i32) {
    %c0_i32 = arith.constant 0 : i32
    %c0_i32_0 = arith.constant 0 : i32
    %c0_i32_1 = arith.constant 0 : i32
    return %c0_i32, %c0_i32_0 : i32, i32
  }
  func.func @transform_5(%arg0: i32, %arg1: i32) -> (i32, i32) {
    %c0_i32 = arith.constant 0 : i32
    %c0_i32_0 = arith.constant 0 : i32
    %c0_i32_1 = arith.constant 0 : i32
    return %c0_i32, %c0_i32_0 : i32, i32
  }
  func.func @transform_6(%arg0: i32, %arg1: i32) -> (i32, i32) {
    %c0_i32 = arith.constant 0 : i32
    %c0_i32_0 = arith.constant 0 : i32
    %c0_i32_1 = arith.constant 0 : i32
    return %c0_i32, %c0_i32_0 : i32, i32
  }
  func.func @transform_7(%arg0: i32, %arg1: i32) -> (i32, i32) {
    %c0_i32 = arith.constant 0 : i32
    %c0_i32_0 = arith.constant 0 : i32
    %c0_i32_1 = arith.constant 0 : i32
    return %c0_i32, %c0_i32_0 : i32, i32
  }
  func.func @transform_8(%arg0: i32, %arg1: i32) -> (i32, i32) {
    %c0_i32 = arith.constant 0 : i32
    %c0_i32_0 = arith.constant 0 : i32
    %c0_i32_1 = arith.constant 0 : i32
    return %c0_i32, %c0_i32_0 : i32, i32
  }
  func.func @transform_9(%arg0: i32, %arg1: i32) -> (i32, i32) {
    %c0_i32 = arith.constant 0 : i32
    %c0_i32_0 = arith.constant 0 : i32
    %c0_i32_1 = arith.constant 0 : i32
    return %c0_i32, %c0_i32_0 : i32, i32
  }
  func.func @transform_10(%arg0: i32, %arg1: i32) -> (i32, i32) {
    %c0_i32 = arith.constant 0 : i32
    %c0_i32_0 = arith.constant 0 : i32
    %c0_i32_1 = arith.constant 0 : i32
    return %c0_i32, %c0_i32_0 : i32, i32
  }
  func.func @transform_11(%arg0: i32, %arg1: i32) -> (i32, i32) {
    %c0_i32 = arith.constant 0 : i32
    %c0_i32_0 = arith.constant 0 : i32
    %c0_i32_1 = arith.constant 0 : i32
    return %c0_i32, %c0_i32_0 : i32, i32
  }
  func.func @transform_12(%arg0: i32, %arg1: i32) -> (i32, i32) {
    %c0_i32 = arith.constant 0 : i32
    %c0_i32_0 = arith.constant 0 : i32
    %c0_i32_1 = arith.constant 0 : i32
    return %c0_i32, %c0_i32_0 : i32, i32
  }
  func.func @transform_13(%arg0: i32, %arg1: i32) -> (i32, i32) {
    %c0_i32 = arith.constant 0 : i32
    %c0_i32_0 = arith.constant 0 : i32
    %c0_i32_1 = arith.constant 0 : i32
    return %c0_i32, %c0_i32_0 : i32, i32
  }
  func.func @transform_14(%arg0: i32, %arg1: i32) -> (i32, i32) {
    %c0_i32 = arith.constant 0 : i32
    %c0_i32_0 = arith.constant 0 : i32
    %c0_i32_1 = arith.constant 0 : i32
    return %c0_i32, %c0_i32_0 : i32, i32
  }
  func.func @transform_15(%arg0: i32, %arg1: i32) -> (i32, i32) {
    %c0_i32 = arith.constant 0 : i32
    %c0_i32_0 = arith.constant 0 : i32
    %c0_i32_1 = arith.constant 0 : i32
    return %c0_i32, %c0_i32_0 : i32, i32
  }
  func.func @transform_16(%arg0: i32, %arg1: i32) -> (i32, i32) {
    %c0_i32 = arith.constant 0 : i32
    %c0_i32_0 = arith.constant 0 : i32
    %c0_i32_1 = arith.constant 0 : i32
    return %c0_i32, %c0_i32_0 : i32, i32
  }
  func.func @transform_17(%arg0: i32, %arg1: i32) -> (i32, i32, i32) {
    %c0_i32 = arith.constant 0 : i32
    %c0_i32_0 = arith.constant 0 : i32
    return %arg0, %arg1, %c0_i32 : i32, i32, i32
  }
}

</mosaic_0001>

<bundles_post_ra>
// kernel: tpu_custom_call.1
= control target key start
LH: loop header
LB: loop body
LE: loop exit
PB: predicated region body
PF: predicated region fallthrough
CT: control target
= control target key end

     0   :  { %s3673_s0 = inlined_call_operand.hbm [shape: f32[2,16,128], index: 0, kind: input, shape index: {}]   ;;  %s3674_s1 = inlined_call_operand.hbm [shape: f32[2,16,128], index: 1, kind: input, shape index: {}]   ;;  %s3675_s2 = inlined_call_operand.vmem [shape: f32[2,1,16], index: 2, kind: input, shape index: {}]   ;;  %s3676_s3 = inlined_call_operand.vmem [shape: f32[1,128], index: 3, kind: input, shape index: {}]   ;;  %s3677_s4 = inlined_call_operand.hbm [shape: f32[1,128], index: 4, kind: input, shape index: {}]   ;;  %s3678_s5 = inlined_call_operand.hbm [shape: bf16[128,128], index: 5, kind: input, shape index: {}]   ;;  %s3679_s6 = inlined_call_operand.vmem [shape: f32[1,128], index: 6, kind: input, shape index: {}]   ;;  %s3680_s7 = inlined_call_operand.hbm [shape: bf16[128,256], index: 7, kind: input, shape index: {}]   ;;  %s3681_s8 = inlined_call_operand.vmem [shape: f32[1,256], index: 8, kind: input, shape index: {}]   ;;  %s3682_s9 = inlined_call_operand.hbm [shape: bf16[128,128], index: 9, kind: input, shape index: {}]   ;;  %s3683_s10 = inlined_call_operand.vmem [shape: f32[1,128], index: 10, kind: input, shape index: {}]   ;;  %s3684_s11 = inlined_call_operand.vmem [shape: f32[1,128], index: 11, kind: input, shape index: {}]   ;;  %s3685_s12 = inlined_call_operand.vmem [shape: f32[1,128], index: 12, kind: input, shape index: {}]   ;;  %s3686_s13 = inlined_call_operand.hbm [shape: bf16[128,256], index: 13, kind: input, shape index: {}]   ;;  %s3687_s14 = inlined_call_operand.vmem [shape: f32[1,256], index: 14, kind: input, shape index: {}]   ;;  %s3688_s15 = inlined_call_operand.hbm [shape: bf16[256,128], index: 15, kind: input, shape index: {}]   ;;  %s3689_s16 = inlined_call_operand.vmem [shape: f32[1,128], index: 16, kind: input, shape index: {}]   ;;  %s3690_s17 = inlined_call_operand.hbm [shape: f32[2,16,128], index: 17, kind: output, shape index: {}]  }
   0x1   :  { %3705 = sst [smem:[#allocation32_spill]] %s3673_s0 }
   0x2   :  { %3706 = sst [smem:[#allocation33_spill]] %s3674_s1 }
   0x3   :  { %3707 = sst [smem:[#allocation34_spill]] %s3675_s2 }
   0x4   :  { %3708 = sst [smem:[#allocation35_spill]] %s3676_s3 }
   0x5   :  { %3709 = sst [smem:[#allocation36_spill]] %s3677_s4 }
   0x6   :  { %3710 = sst [smem:[#allocation37_spill]] %s3678_s5 }
   0x7   :  { %3711 = sst [smem:[#allocation38_spill]] %s3679_s6 }
   0x8   :  { %3712 = sst [smem:[#allocation39_spill]] %s3680_s7 }
   0x9   :  { %3713 = sst [smem:[#allocation40_spill]] %s3681_s8 }
   0xa   :  { %3714 = sst [smem:[#allocation41_spill]] %s3682_s9 }
   0xb   :  { %3715 = sst [smem:[#allocation42_spill]] %s3683_s10 }
   0xc   :  { %3716 = sst [smem:[#allocation43_spill]] %s3684_s11 }
   0xd   :  { %3717 = sst [smem:[#allocation44_spill]] %s3685_s12 }
   0xe   :  { %3718 = sst [smem:[#allocation45_spill]] %s3686_s13 }
   0xf   :  { %3719 = sst [smem:[#allocation46_spill]] %s3687_s14 }
  0x10   :  { %3720 = sst [smem:[#allocation47_spill]] %s3688_s15 }
  0x11   :  { %3721 = sst [smem:[#allocation48_spill]] %s3689_s16 }
  0x12   :  { %3722 = sst [smem:[#allocation49_spill]] %s3690_s17 }
  0x13   :  { %22 = vsyncpa [#allocation4], 0 }
  0x14   :  { %24 = vsyncpa [#allocation4 + $0x1], 0 }
  0x15   :  { %25 = vsyncpa [#allocation7], 0 }
  0x16   :  { %27 = vsyncpa [#allocation7 + $0x1], 0 }
  0x17   :  { %28 = vsyncpa [#allocation10], 0 }
  0x18   :  { %29 = vsyncpa [#allocation13], 0 }
  0x19   :  { %30 = vsyncpa [#allocation16], 0 }
  0x1a   :  { %31 = vsyncpa [#allocation5], 0 }
  0x1b   :  { %33 = vsyncpa [#allocation5 + $0x1], 0  ;;  %s3170_s24 = smov 0   ;;  %s3172_s25 = smov 0  }
  0x1c   :  { %s3174_s26 = smov 0   ;;  %s3176_s27 = smov 0  }
  0x1d   :  { %s3178_s28 = smov 0   ;;  %s3180_s29 = smov 0  }
  0x1e   :  { %s3182_s0 = smov 0   ;;  %s3184_s30 = smov 0  }
  0x1f   :  { %s3186_s18 = smov 0   ;;  %s3188_s19 = smov 0  }
  0x20   :  { %s3190_s1 = smov 0  }
  0x21 LB: > { %3723 = sst [smem:[#allocation25_spill]] %s3018_s24  ;;  %s3226_s20 = sadd.s32 4294967295, %s3058_s1   ;;  %s3058_s1 = sphi %s3190_s1, %s39_s1   ;;  %s3054_s19 = sphi %s3188_s19, %s3793_s19   ;;  %s3050_s18 = sphi %s3186_s18, %s3792_s18   ;;  %s3046_s30 = sphi %s3184_s30, %s3791_s30   ;;  %s3042_s0 = sphi %s3182_s0, %s3790_s0   ;;  %s3038_s29 = sphi %s3180_s29, %s3789_s29   ;;  %s3034_s28 = sphi %s3178_s28, %s3788_s28   ;;  %s3030_s27 = sphi %s3176_s27, %s3787_s27   ;;  %s3026_s26 = sphi %s3174_s26, %s3786_s26   ;;  %s3022_s25 = sphi %s3172_s25, %s3785_s25   ;;  %s3018_s24 = sphi %s3170_s24, %s3784_s24  }
  0x22   : > { %3724 = sst [smem:[#allocation26_spill]] %s3042_s0  ;;  %p2164_p0 = scmp.ge.s32.totalorder %s3058_s1, 1 }
  0x23   : > { %3725 = sst [smem:[#allocation27_spill]] %s3046_s30  ;;  %p3696_p1 = scmp.eq.s32.totalorder %s3226_s20, 0 }
  0x24   : > { %p458_p2 = scmp.lt.s32.totalorder %s3058_s1, 5  ;;  %s3060_s22 = smov [#allocation8]  }
  0x25   : > { %s474_s23 = sshll.u32 %s3060_s22, 4  ;;  %s3061_s17 = smov [#allocation9]   ;;  %s475_s23 = int_to_ptr.vmem [resolvable:$true] %s474_s23 }
  0x26   : > { %p3231_p3 = pnand %p2164_p0, %p458_p2  ;;  %s484_s12 = sshll.u32 %s3061_s17, 4  ;;  %s3243_s12 = int_to_ptr.vmem [resolvable:$true] %s484_s12 }
  0x27   : > { %s3062_s16 = smov [#allocation12]   ;;  %s2717_s22 = scalar_lea.vmem %s475_s23, 16 }
  0x28   : > { %p2454_p4 = pneg %p3231_p3  ;;  %s516_s14 = sshll.u32 %s3062_s16, 4  ;;  %s517_s14 = int_to_ptr.vmem [resolvable:$true] %s516_s14 }
  0x29   : > { %p2718_p7 = scmp.ne.s32.totalorder %s475_s23, %s2717_s22  ;;  %s2724_s17 = scalar_lea.vmem %s475_s23, 32 }
  0x2a   : > { %p3239_p5 = pnand %p2454_p4, %p3696_p1  ;;  %p2725_p10 = scmp.lt.s32.totalorder %s475_s23, %s475_s23 }
  0x2b   : > { %p2726_p11 = scmp.lt.s32.totalorder %s2724_s17, %s2717_s22 }
  0x2c   : > { %p3247_p6 = pneg %p3239_p5 }
  0x2d   : > { %p2727_p12 = por %p2726_p11, %p2725_p10 }
  0x2e   : > { %p2720_p8 = pnand %p2718_p7, %p3247_p6 }
  0x30   : > { %p2721_p9 = pneg %p2720_p8 }
  0x32   : > { %p2728_p13 = pnand %p2727_p12, %p2721_p9 }
  0x34   : > { %2731 = shalt.err (!%p2728_p13)
}
  0x35   : > { %s3729_s4 = sld [smem:[#allocation36_spill]]  ;;  %s2743_s6 = scalar_lea.vmem %s3243_s12, 1024 }
  0x36   : > { %p2744_p0 = scmp.ne.s32.totalorder %s3243_s12, %s2743_s6  ;;  %p2751_p7 = scmp.lt.s32.totalorder %s3243_s12, %s3243_s12 }
  0x37   : > { %p2752_p8 = scmp.lt.s32.totalorder %s2743_s6, %s2743_s6 }
  0x38   : > { %p2746_p2 = pnand %p2744_p0, %p3247_p6 }
  0x39   : > { %p2753_p9 = por %p2752_p8, %p2751_p7 }
  0x3a   : > { %p2747_p4 = pneg %p2746_p2 }
  0x3b   : > { %2457 = dma.hbm_to_vmem [thread:$0]  (!%p3239_p5), %s3729_s4, 16, %s475_s23, [#allocation7]  }
  0x3c   : > { %p2754_p10 = pnand %p2753_p9, %p2747_p4 }
  0x3e   : > { %2757 = shalt.err (!%p2754_p10)
}
  0x3f   : > { %s3692_s22 = smov 64   ;;  %s3693_s10 = smov 4  }
  0x40   : > { %s3730_s5 = sld [smem:[#allocation37_spill]]  ;;  %s2769_s16 = scalar_lea.vmem %s517_s14, 1024 }
  0x41   : > { %p2770_p11 = scmp.ne.s32.totalorder %s517_s14, %s2769_s16  ;;  %p2777_p0 = scmp.lt.s32.totalorder %s517_s14, %s517_s14 }
  0x42   : > { %p2778_p2 = scmp.lt.s32.totalorder %s2769_s16, %s2769_s16 }
  0x43   : > { %p2772_p12 = pnand %p2770_p11, %p3247_p6 }
  0x44   : > { %p2779_p4 = por %p2778_p2, %p2777_p0 }
  0x45   : > { %p2773_p13 = pneg %p2772_p12 }
  0x46   : > { %2460 = dma.hbm_to_vmem [thread:$0]  (!%p3239_p5), %s3730_s5, 1024, %s3243_s12, [#allocation10], %s3692_s22, %s3692_s22, %s3693_s10  }
  0x47   : > { %p2780_p7 = pnand %p2779_p4, %p2773_p13 }
  0x49   : > { %2783 = shalt.err (!%p2780_p7)
}
  0x4a   : > { %s3731_s9 = sld [smem:[#allocation41_spill]]  ;;  %s3065_s12 = smov [#allocation11]  }
  0x4b   : > { %s500_s23 = sshll.u32 %s3065_s12, 4  ;;  %s501_s23 = int_to_ptr.vmem [resolvable:$true] %s500_s23 }
  0x4c   : > { %s2795_s17 = scalar_lea.vmem %s501_s23, 2048  ;;  %p2803_p11 = scmp.lt.s32.totalorder %s501_s23, %s501_s23 }
  0x4d   : > { %p2796_p8 = scmp.ne.s32.totalorder %s501_s23, %s2795_s17  ;;  %p2804_p12 = scmp.lt.s32.totalorder %s2795_s17, %s2795_s17 }
  0x4f   : > { %p2798_p9 = pnand %p2796_p8, %p3247_p6  ;;  %p2805_p13 = por %p2804_p12, %p2803_p11 }
  0x50   : > { %2466 = dma.hbm_to_vmem [thread:$0]  (!%p3239_p5), %s3731_s9, 1024, %s517_s14, [#allocation13], %s3692_s22, %s3692_s22, %s3693_s10  }
  0x51   : > { %p2799_p10 = pneg %p2798_p9 }
  0x53   : > { %p2806_p0 = pnand %p2805_p13, %p2799_p10 }
  0x55   : > { %2809 = shalt.err (!%p2806_p0)
}
  0x56   : > { %s3694_s16 = smov 128   ;;  %s3695_s5 = smov 8  }
  0x57   : > { %s3732_s7 = sld [smem:[#allocation39_spill]]  ;;  %s3068_s6 = smov [#allocation14]  }
  0x58   : > { %s538_s12 = sshll.u32 %s3068_s6, 4  ;;  %s3069_s22 = smov [#allocation15]   ;;  %s539_s12 = int_to_ptr.vmem [resolvable:$true] %s538_s12 }
  0x59   : > { %s554_s10 = sshll.u32 %s3069_s22, 4  ;;  %s2821_s17 = scalar_lea.vmem %s539_s12, 2048  ;;  %s555_s10 = int_to_ptr.vmem [resolvable:$true] %s554_s10 }
  0x5a   : > { %p2822_p2 = scmp.ne.s32.totalorder %s539_s12, %s2821_s17  ;;  %p2829_p8 = scmp.lt.s32.totalorder %s539_s12, %s539_s12 }
  0x5b   : > { %p2830_p9 = scmp.lt.s32.totalorder %s2821_s17, %s2821_s17 }
  0x5c   : > { %p2824_p4 = pnand %p2822_p2, %p3247_p6 }
  0x5d   : > { %2463 = dma.hbm_to_vmem [thread:$0]  (!%p3239_p5), %s3732_s7, 2048, %s501_s23, [#allocation10], %s3694_s16, %s3694_s16, %s3695_s5  }
  0x5e   : > { %p2825_p7 = pneg %p2824_p4  ;;  %p2831_p10 = por %p2830_p9, %p2829_p8 }
  0x60   : > { %p2832_p11 = pnand %p2831_p10, %p2825_p7 }
  0x62   : > { %2835 = shalt.err (!%p2832_p11)
}
  0x63   : > { %s3733_s13 = sld [smem:[#allocation45_spill]]  ;;  %s2847_s22 = scalar_lea.vmem %s555_s10, 2048 }
  0x64   : > { %p2848_p12 = scmp.ne.s32.totalorder %s555_s10, %s2847_s22  ;;  %p2855_p2 = scmp.lt.s32.totalorder %s555_s10, %s555_s10 }
  0x65   : > { %p2856_p4 = scmp.lt.s32.totalorder %s2847_s22, %s2847_s22 }
  0x66   : > { %p2850_p13 = pnand %p2848_p12, %p3247_p6 }
  0x67   : > { %p2857_p8 = por %p2856_p4, %p2855_p2 }
  0x68   : > { %p2851_p0 = pneg %p2850_p13 }
  0x69   : > { %2469 = dma.hbm_to_vmem [thread:$0]  (!%p3239_p5), %s3733_s13, 2048, %s539_s12, [#allocation13], %s3694_s16, %s3694_s16, %s3695_s5  }
  0x6a   : > { %p2858_p7 = pnand %p2857_p8, %p2851_p0 }
  0x6c   : > { %2861 = shalt.err (!%p2858_p7)
}
  0x6d   : > { %s3734_s14 = smov 4   ;;  %s3735_s6 = smov 64  }
  0x6e   : > { %s3736_s15 = sld [smem:[#allocation47_spill]]  ;;  %p65_p6 = scmp.ne.s32.totalorder %s3038_s29, %s3034_s28 }
  0x6f   : > { %p66_p9 = scmp.eq.s32.totalorder %s3058_s1, 0  ;;  %p71_p10 = scmp.ne.s32.totalorder %s3034_s28, %s3030_s27 }
  0x70   : > { %p2490_p11 = scmp.lt.s32.totalorder %s3058_s1, 4  ;;  %s571_s11 = sand.u32 1, %s3038_s29  }
  0x71   : > { %p67_p12 = por %p66_p9, %p65_p6  ;;  %p3325_p13 = por %p3696_p1, %p71_p10 }
  0x72   : > { %s2172_s12 = sshll.u32 %s571_s11, 4  ;;  %s2277_s23 = sshll.u32 %s3054_s19, 8 }
  0x73   : > { %s3738_s17 = sld [smem:[#allocation32_spill]]  ;;  %s3070_s5 = smov [#allocation3]  }
  0x74   : > { %2472 = dma.hbm_to_vmem [thread:$0]  (!%p3239_p5), %s3736_s15, 2048, %s555_s10, [#allocation16], %s3735_s6, %s3735_s6, %s3734_s14  }
  0x75   : > { %s575_s10 = scalar_lea.vmem [#allocation3], %s2172_s12  ;;  %p3335_p5 = pnand %p2490_p11, %p67_p12 }
  0x76   : > { %s582_s14 = sshll.u32 %s575_s10, 4  ;;  %s572_s6 = scalar_lea.sflag [#allocation4], %s571_s11  ;;  %s583_s14 = int_to_ptr.vmem [resolvable:$true] %s582_s14 }
  0x77   : > { %p2864_p0 = pneg %p3335_p5  ;;  %s2875_s3 = scalar_lea.vmem %s583_s14, 256 }
  0x78   : > { %p2876_p2 = scmp.ne.s32.totalorder %s583_s14, %s2875_s3  ;;  %s2880_s9 = sshll.u32 %s3070_s5, 4  ;;  %s2881_s9 = int_to_ptr.vmem [resolvable:$false] %s2880_s9 }
  0x79   : > { %s581_s16 = scalar_lea.hbm %s3738_s17, %s2277_s23  ;;  %s2882_s23 = scalar_lea.vmem %s2881_s9, 512 }
  0x7a   : > { %p2878_p4 = pnand %p2876_p2, %p2864_p0  ;;  %p2883_p7 = scmp.lt.s32.totalorder %s583_s14, %s2881_s9 }
  0x7b   : > { %p2884_p6 = scmp.lt.s32.totalorder %s2882_s23, %s2875_s3 }
  0x7c   : > { %p2879_p8 = pneg %p2878_p4 }
  0x7d   : > { %p2885_p10 = por %p2884_p6, %p2883_p7 }
  0x7f   : > { %p2886_p1 = pnand %p2885_p10, %p2879_p8 }
  0x81   : > { %2889 = shalt.err (!%p2886_p1)
}
  0x82   : > { %s3740_s12 = smov 8   ;;  %s3741_s4 = smov 128  }
  0x83   : > { %2476 = dma.hbm_to_vmem [thread:$0]  (!%p3335_p5), %s581_s16, 256, %s583_s14, %s572_s6, %s3741_s4, %s3741_s4, %s3740_s12  }
  0x84   : > { %s2163_s5 = sadd.s32 4294967294, %s3058_s1   ;;  %s48_s9 = sadd.s32 1, %s3050_s18 }
  0x85   : > { %s51_s3 = sadd.s32 1, %s3054_s19  ;;  %p49_p1 = scmp.ge.s32.totalorder %s48_s9, 2 }
  0x86   : > { %s86_s11 = sadd.s32 1, %s3026_s26  ;;  %p93_p12 = scmp.ne.s32.totalorder %s3026_s26, %s3022_s25 }
  0x87   : > { %p99_p0 = scmp.ne.s32.totalorder %s3022_s25, %s3018_s24  ;;  %s3795_s9 = smov (%p49_p1, %s48_s9), 0 }
  0x88   : > { %3742 = sst [smem:[#allocation28_spill]] %s3795_s9  ;;  %s3797_s3 = smov (!%p49_p1, %s51_s3), %s3054_s19 }
  0x89   : > { %s82_s22 = ssub.s32 %s3050_s18, %s3795_s9  ;;  %p3361_p5 = por %p93_p12, %p66_p9 }
  0x8a   : > { %p53_p2 = scmp.ge.s32.totalorder %s3797_s3, 2  ;;  %p3744_p4 = scmp.eq.s32.totalorder %s3226_s20, 0 }
  0x8b   : > { %p445_p7 = scmp.eq.s32.totalorder %s3226_s20, 3  ;;  %p451_p6 = scmp.eq.s32.totalorder %s2163_s5, 3 }
  0x8c   : > { %p3367_p8 = por %p99_p0, %p3744_p4  ;;  %s3799_s3 = smov (%p53_p2, %s3797_s3), 0 }
  0x8d   : > { %3746 = sst [smem:[#allocation29_spill]] %s3799_s3  ;;  %p3374_p10 = por %p445_p7, %p93_p12 }
  0x8e   : > { %p3378_p9 = por %p451_p6, %p99_p0  ;;  %s55_s27 = ssub.s32 %s3054_s19, %s3799_s3 }
  0x8f   : > { %s3747_s10 = scalar_select %p3374_p10, 1, 0 }
  0x90   : > { %s3749_s14 = scalar_select %p3378_p9, 1, 0 }
  0x91   : > { %3748 = sst [smem:[#allocation30_spill]] %s3747_s10  ;;  %s592_s6 = sand.u32 1, %s3058_s1  }
  0x92   : > { %3750 = sst [smem:[#allocation31_spill]] %s3749_s14  ;;  %p56_p1 = scmp.eq.s32.totalorder %s55_s27, 0 }
  0x93   : > { %s83_s23 = sor.u32 %s82_s22, %s55_s27  ;;  %s3751_s12 = sadd.s32 1, %s3038_s29 }
  0x94   : > { %p84_p4 = scmp.eq.s32.totalorder %s83_s23, 0  ;;  %s594_s13 = sand.u32 1, %s3026_s26  }
  0x95   : > { %s3388_s4 = scalar_select %p56_p1, %s3038_s29, %s3751_s12  }
  0x96   : > { %s3391_s5 = scalar_select %p84_p4, %s3026_s26, %s86_s11  }
  0x97   : > { %s2176_s15 = sshll.u32 %s3054_s19, 1  ;;  %s2175_s9 = sshll.u32 %s594_s13, 3 }
  0x98   : > { %s601_s24 = sadd.s32 %s3050_s18, %s2176_s15  ;;  %s3752_s14 = sld [smem:[#allocation33_spill]] }
  0x99   : > { %s2177_s10 = sshll.u32 %s601_s24, 7  ;;  %s596_s2 = scalar_lea.vmem [#allocation6], %s2175_s9 }
  0x9a   : > { %s605_s30 = sshll.u32 %s596_s2, 4  ;;  %p3403_p12 = pnand %p2490_p11, %p3361_p5  ;;  %s606_s30 = int_to_ptr.vmem [resolvable:$true] %s605_s30 }
  0x9b   : > { %s593_s11 = scalar_lea.sflag [#allocation7], %s592_s6  ;;  %s2903_s13 = scalar_lea.vmem %s606_s30, 128 }
  0x9c   : > { %p2892_p0 = pneg %p3403_p12  ;;  %p2904_p2 = scmp.ne.s32.totalorder %s606_s30, %s2903_s13 }
  0x9d   : > { %s3071_s15 = smov [#allocation6]  }
  0x9e   : > { %s603_s3 = scalar_lea.hbm %s3752_s14, %s2177_s10  ;;  %p2906_p7 = pnand %p2904_p2, %p2892_p0 }
  0x9f   : > { %s2908_s8 = sshll.u32 %s3071_s15, 4  ;;  %s2909_s8 = int_to_ptr.vmem [resolvable:$false] %s2908_s8 }
  0xa0   : > { %p2907_p6 = pneg %p2906_p7  ;;  %s2910_s24 = scalar_lea.vmem %s2909_s8, 256 }
  0xa1   : > { %p2911_p1 = scmp.lt.s32.totalorder %s606_s30, %s2909_s8  ;;  %p2912_p4 = scmp.lt.s32.totalorder %s2910_s24, %s2903_s13 }
  0xa3   : > { %p2913_p9 = por %p2912_p4, %p2911_p1 }
  0xa5   : > { %p2914_p10 = pnand %p2913_p9, %p2907_p6 }
  0xa7   : > { %2917 = shalt.err (!%p2914_p10)
}
  0xa8   : > { %2479 = dma.hbm_to_vmem [thread:$0]  (!%p3403_p12), %s603_s3, 128, %s606_s30, %s593_s11  }
  0xa9   : > { %620 = sbr.rel (%p3231_p3) target bundleno = 3653 (0xe45), region = 88  ;;  %s622_s2 = sand.u32 (!%p3231_p3), 1, %s3034_s28  }
  0xaa   : > { %s3414_s0 = sshll.u32 (!%p3231_p3), %s622_s2, 4  ;;  %s623_s9 = scalar_lea.sflag (!%p3231_p3), [#allocation4], %s622_s2 }
  0xab   : > { %s626_s16 = scalar_lea.vmem (!%p3231_p3), [#allocation3], %s3414_s0 }
  0xae   : > { %2989 = dma.done.wait (%p3325_p13), %s623_s9, 256  }
  0xaf   : > { %2991 = vsyncadd (%p3325_p13), %s623_s9, 4294967040  ;;  %s631_s30 = sand.u32 1, %s3226_s20   ;;  %s633_s21 = sand.u32 1, %s3022_s25  }
  0xb0   : > { %s3425_s3 = sshll.u32 %s633_s21, 3  ;;  %s632_s10 = scalar_lea.sflag [#allocation7], %s631_s30 }
  0xb1   : > { %s635_s14 = scalar_lea.vmem [#allocation6], %s3425_s3 }
  0xb2   : > { %2993 = dma.done.wait (%p3367_p8), %s632_s10, 128  }
  0xb3   : > { %2995 = vsyncadd (%p3367_p8), %s632_s10, 4294967168  ;;  %p3754_p3 = scmp.eq.s32.totalorder %s3226_s20, 0 }
  0xb5   : > { %2997 = dma.done.wait (%p3754_p3), [#allocation7], 16   ;;  %p3755_p11 = pmov %p3754_p3 }
  0xb6   : > { %p3756_p13 = pmov %p3754_p3 }
  0xb7   : > { %2999 = vsyncadd (%p3755_p11), [#allocation7], 4294967280 }
  0xb8   : > { %3001 = dma.done.wait (%p3756_p13), [#allocation10], 3072   ;;  %p3757_p5 = pmov %p3754_p3 }
  0xb9   : > { %p3758_p10 = pmov %p3754_p3 }
  0xba   : > { %3003 = vsyncadd (%p3757_p5), [#allocation10], 4294964224 }
  0xbb   : > { %3005 = dma.done.wait (%p3758_p10), [#allocation13], 3072   ;;  %p3759_p9 = pmov %p3754_p3 }
  0xbc   : > { %p3760_p8 = pmov %p3754_p3 }
  0xbd   : > { %3007 = vsyncadd (%p3759_p9), [#allocation13], 4294964224 }
  0xbe   : > { %3009 = dma.done.wait (%p3760_p8), [#allocation16], 2048   ;;  %p3761_p12 = pmov %p3754_p3 }
  0xbf   : > { %s3762_s7 = sld [smem:[#allocation27_spill]]  ;;  %s717_s12 = scalar_lea.vmem [#allocation17], %s3425_s3 }
  0xc0   : > { %3011 = vsyncadd (%p3761_p12), [#allocation16], 4294965248  ;;  %s3763_s6 = sld [smem:[#allocation34_spill]] }
  0xc1   : > { %s3764_s22 = sld [smem:[#allocation26_spill]] }
  0xc5   : > { %p718_p0 = scmp.lt.s32.totalorder %s3762_s7, 1 }
  0xc7   : > { %s3801_s7 = smov (!%p718_p0, %s3762_s7), 1  ;;  %p2188_p2 = scmp.ne.s32.totalorder %s3764_s22, 0 }
  0xc8   : > { %s720_s23 = scalar_lea.vmem %s3763_s6, %s3801_s7  ;;  %s3765_s13 = sld [smem:[#allocation40_spill]] (!%p2188_p2) }
  0xc9   : > { %725 = sbr.rel (%p2188_p2) target bundleno = 443 (0x1bb), region = 124 }
  0xce   : > { %v2603_v0 = vld [vmem:[#allocation11 + $0x74] ss:$8 sps:$4 sm:$0xff]   ;;  %v2605_v1 = vld [vmem:[#allocation11 + $0x70] ss:$8 sps:$4 sm:$0xff]   ;;  %v3072_v2 = vmov 0   ;;  %v747_v20 = vlaneseq }
  0xcf   : > { %869 = vmatprep.mubr.bf16.mxu0 %v3072_v2  ;;  %837 = vmatprep.subr.bf16.mxu0 %v2603_v0  ;;  %v2606_v3 = vld [vmem:[#allocation11 + $0x64] ss:$8 sps:$4 sm:$0xff]   ;;  %v2608_v4 = vld [vmem:[#allocation11 + $0x60] ss:$8 sps:$4 sm:$0xff]   ;;  %v2609_v5 = vld [vmem:[#allocation11 + $0x54] ss:$8 sps:$4 sm:$0xff]  }
  0xd0   : > { %838 = vmatpush1.bf16.msra.mxu0 %v2605_v1  ;;  %v2611_v6 = vld [vmem:[#allocation11 + $0x50] ss:$8 sps:$4 sm:$0xff]   ;;  %v2612_v7 = vld [vmem:[#allocation11 + $0x44] ss:$8 sps:$4 sm:$0xff]   ;;  %v2614_v8 = vld [vmem:[#allocation11 + $0x40] ss:$8 sps:$4 sm:$0xff]  }
  0xd1   : > { %839 = vmatprep.subr.bf16.mxu0 %v2606_v3  ;;  %v2615_v9 = vld [vmem:[#allocation11 + $0x34] ss:$8 sps:$4 sm:$0xff]   ;;  %v2617_v10 = vld [vmem:[#allocation11 + $0x30] ss:$8 sps:$4 sm:$0xff]   ;;  %v2618_v11 = vld [vmem:[#allocation11 + $0x24] ss:$8 sps:$4 sm:$0xff]  }
  0xd2   : > { %v2620_v12 = vld [vmem:[#allocation11 + $0x20] ss:$8 sps:$4 sm:$0xff]   ;;  %v2621_v13 = vld [vmem:[#allocation11 + $0x14] ss:$8 sps:$4 sm:$0xff]   ;;  %v2623_v14 = vld [vmem:[#allocation11 + $0x10] ss:$8 sps:$4 sm:$0xff]  }
  0xd3   : > { %v2624_v15 = vld [vmem:[#allocation11 + $0x4] ss:$8 sps:$4 sm:$0xff]   ;;  %v2626_v16 = vld [vmem:[#allocation11] ss:$8 sps:$4 sm:$0xff]   ;;  %v748_v21 = vshrl.u32 %v747_v20, 7 }
  0xd4   : > { %840 = vmatpush1.bf16.msra.mxu0 %v2608_v4  ;;  %v726_v17 = vld [vmem:[%s626_s16] sm:$0xff]  ;;  %v727_v18 = vld [vmem:[%s626_s16 + $0x8] sm:$0xff] }
  0xd5   : > { %841 = vmatprep.subr.bf16.mxu0 %v2609_v5  ;;  %v728_v19 = vpack.c.bf16 %v727_v18, %v726_v17  ;;  %v749_v22 = vsub.s32 0, %v748_v21  ;;  %v753_v23 = vsub.s32 1, %v748_v21  ;;  %v745_v24 = vld [vmem:[%s3765_s13] sm:$0x3] }
  0xd7   : > { %v750_v25 = vrot.slane %v745_v24, %v749_v22  ;;  %v754_v26 = vrot.slane %v745_v24, %v753_v23 }
  0xd8   : > { %842 = vmatpush1.bf16.msra.mxu0 %v2611_v6 }
  0xd9   : > { %843 = vmatprep.subr.bf16.mxu0 %v2612_v7 }
  0xdc   : > { %844 = vmatpush1.bf16.msra.mxu0 %v2614_v8 }
  0xdd   : > { %845 = vmatprep.subr.bf16.mxu0 %v2615_v9 }
  0xe0   : > { %846 = vmatpush1.bf16.msra.mxu0 %v2617_v10 }
  0xe1   : > { %847 = vmatprep.subr.bf16.mxu0 %v2618_v11 }
  0xe4   : > { %848 = vmatpush1.bf16.msra.mxu0 %v2620_v12 }
  0xe5   : > { %849 = vmatprep.subr.bf16.mxu0 %v2621_v13 }
  0xe8   : > { %850 = vmatpush1.bf16.msra.mxu0 %v2623_v14 }
  0xe9   : > { %851 = vmatprep.subr.bf16.mxu0 %v2624_v15 }
  0xec   : > { %852 = vmatpush1.bf16.msra.mxu0 %v2626_v16 }
  0xef   : > { %870 = vmatmul.mubr.bf16.vlgmr.msra.gmra.mxu0 %v728_v19 }
 0x1af   : > { %v871_v27 = vpop.f32.mrf.mxu0 }
 0x1b0   : > { %v872_v29 = vadd.f32 %v871_v27, %v750_v25 }
 0x1b1   : > { %v873_v28 = vpop.f32.mrf.mxu0 }
 0x1b2   : > { %v874_v30 = vadd.f32 %v873_v28, %v754_v26 }
 0x1b3   : > { %v875_v31 = vpop.f32.mrf.mxu0 }
 0x1b4   : > { %v2278_v32 = vpack.c.bf16 %v874_v30, %v872_v29  ;;  %v876_v34 = vadd.f32 %v875_v31, %v750_v25 }
 0x1b5   : > { %v877_v33 = vpop.f32.mrf.mxu0 }
 0x1b6   : > { %892 = vst [vmem:[#allocation2] sm:$0xff] %v2278_v32  ;;  %v878_v35 = vadd.f32 %v877_v33, %v754_v26 }
 0x1b8   : > { %v2279_v36 = vpack.c.bf16 %v878_v35, %v876_v34 }
 0x1ba   : > { %893 = vst [vmem:[#allocation2 + $0x8] sm:$0xff] %v2279_v36 }
 0x1bb PF: > { %v2627_v37 = vld [vmem:[#allocation9 + $0x38] sm:$0xff]   ;;  %v3073_v38 = vmov 0.0   ;;  %v2628_v39 = vld [vmem:[#allocation9 + $0x30] sm:$0xff]   ;;  %vm3074_vm0 = vmmov 0   ;;  %v2629_v40 = vld [vmem:[#allocation9 + $0x28] sm:$0xff]   ;;  %vm1024_vm1 = vcmask 261120   ;;  %v899_v58 = vlaneseq }
 0x1bc   : > { %2336 = vmatprep.subr.bf16.mxu0 %v3073_v38  ;;  %2356 = vmatprep.subr.bf16.mxu1 %v3073_v38  ;;  %v2630_v41 = vld [vmem:[#allocation9 + $0x20] sm:$0xff]   ;;  %v2631_v44 = vld [vmem:[#allocation9 + $0x18] sm:$0xff]   ;;  %v2632_v45 = vld [vmem:[#allocation9 + $0x10] sm:$0xff]   ;;  %s3766_s24 = sld [smem:[#allocation38_spill]]  ;;  %s3075_s2 = smov 96   ;;  %vm1071_vm3 = vcmask 130048  }
 0x1bd   : > { %2337 = vmatpush3.bf16.msra.mxu0 %v2627_v37  ;;  %2352 = vmatprep.mubr.msk.bf16.mxu0 %vm3074_vm0, %v3073_v38  ;;  %v2633_v46 = vld [vmem:[#allocation9 + $0x8] sm:$0xff]   ;;  %v2634_v47 = vld [vmem:[#allocation9] sm:$0xff]   ;;  %v895_v59 = vld [vmem:[%s720_s23] sm:$0x1]  ;;  %v3508_v60 = vshrl.u32 %v899_v58, 7  ;;  %s3076_s30 = smov 64  }
 0x1be   : > { %2338 = vmatprep.subr.bf16.mxu0 %v3073_v38  ;;  %2358 = vmatprep.mubr.msk.bf16.mxu1 %vm3074_vm0, %v3073_v38  ;;  %v3484_v48 = vld [vmem:[%s635_s14] sm:$0xff]  ;;  %vm896_vm2 = vcmp.eq.f32.partialorder %v895_v59, 0.0  ;;  %s3077_s10 = smov 32   ;;  %vm1469_vm4 = vcmask 523264   ;;  %vm1471_vm5 = vcmask 785408   ;;  %s3768_s17 = sld [smem:[#allocation42_spill]] }
 0x1bf   : > { %v904_v49 = vpack.c.bf16 %v3484_v48, %v3484_v48  ;;  %v901_v61 = vsub.s32 0, %v3508_v60  ;;  %v897_v62 = vsel %vm896_vm2, -1e+10, %v3073_v38  ;;  %s3769_s23 = sld [smem:[#allocation35_spill]]  ;;  %s1973_s15 = scalar_lea.sflag [#allocation5], %s633_s21 }
 0x1c0   : > { %s3770_s11 = sld [smem:[#allocation46_spill]] }
 0x1c1   : > { %2339 = vmatpush3.bf16.msra.mxu0 %v2628_v39  ;;  %v3473_v42 = vld [vmem:[#allocation2] ss:$8 sps:$4 sm:$0xff]   ;;  %v3499_v57 = vld [vmem:[#allocation2 + $0x4] ss:$8 sps:$4 sm:$0xff]   ;;  %v3514_v63 = vrot.slane %v897_v62, %v901_v61  ;;  %s3771_s8 = sld [smem:[#allocation48_spill]] }
 0x1c2   : > { %2340 = vmatprep.subr.bf16.mxu0 %v3073_v38  ;;  %v1029_v43 = vsel %vm1024_vm1, %v3473_v42, 0  ;;  %v2207_v50 = vld [vmem:[%s3766_s24] ss:$0 sm:$0xff]  ;;  %s3772_s24 = sld [smem:[#allocation27_spill]] }
 0x1c3   : > { %2357 = vmatpush3.bf16.xpose.msra.mxu1 %v1029_v43  ;;  %s3774_s9 = sld [smem:[#allocation30_spill]] }
 0x1c4   : > { %2362 = vmatprep.subr.bf16.mxu1 %v3073_v38  ;;  %s3775_s14 = sld [smem:[#allocation43_spill]] }
 0x1c5   : > { %2341 = vmatpush3.bf16.msra.mxu0 %v2629_v40  ;;  %s3776_s27 = sld [smem:[#allocation44_spill]] }
 0x1c6   : > { %2342 = vmatprep.subr.bf16.mxu0 %v3073_v38 }
 0x1c8   : > { %s2273_s0 = sshll.u32 %s3772_s24, 1  ;;  %s3079_s24 = smov [#allocation17]  }
 0x1c9   : > { %2343 = vmatpush3.bf16.msra.mxu0 %v2630_v41  ;;  %p3778_p6 = scmp.ne.s32.totalorder %s3774_s9, 0 }
 0x1ca   : > { %2344 = vmatprep.subr.bf16.mxu0 %v3073_v38 }
 0x1cd   : > { %2345 = vmatpush3.bf16.msra.mxu0 %v2631_v44 }
 0x1ce   : > { %2346 = vmatprep.subr.bf16.mxu0 %v3073_v38 }
 0x1d1   : > { %2347 = vmatpush3.bf16.msra.mxu0 %v2632_v45 }
 0x1d2   : > { %2348 = vmatprep.subr.bf16.mxu0 %v3073_v38 }
 0x1d5   : > { %2349 = vmatpush3.bf16.msra.mxu0 %v2633_v46 }
 0x1d6   : > { %2350 = vmatprep.subr.bf16.mxu0 %v3073_v38 }
 0x1d9   : > { %2351 = vmatpush3.bf16.msra.mxu0 %v2634_v47 }
 0x1da   : > { %2404 = vmatprep.subr.bf16.mxu0 %v3073_v38 }
 0x1dc   : > { %2353 = vmatmul.mubr.bf16.vlgmr.msra.gmra.mxu0 %v904_v49 }
 0x1dd   : > { %2420 = vmatprep.mubr.msk.bf16.mxu0 %vm3074_vm0, %v3073_v38 }
 0x29c   : > { %v1010_v51 = vpop.f32.mrf.mxu0 }
 0x29d   : > { %v1011_v52 = vadd.f32 %v2207_v50, %v1010_v51 }
 0x29e   : > { %v2354_v53 = vpop.f32.mrf.mxu0 }
 0x29f   : > { %v1016_v54 = vpack.c.bf16 %v1011_v52, %v1011_v52 }
 0x2a0   : > { %v1013_v55 = vpop.f32.mrf.mxu0 }
 0x2a1   : > { %1132 = vrot.lane.b32.xlu1 %v1016_v54, %s3075_s2  ;;  %2359 = vmatmul.mubr.msk.bf16.vlgmr.msra.gmra.mxu1 %vm1024_vm1, %v1016_v54 }
 0x2a2   : > { %v2355_v56 = vpop.f32.mrf.mxu0  ;;  %2364 = vmatprep.mubr.msk.bf16.mxu1 %vm3074_vm0, %v3073_v38  ;;  %2363 = vmatpush3.bf16.msra.mxu1 %v3499_v57 }
 0x2a3   : > { %2368 = vmatprep.subr.bf16.mxu1 %v3073_v38 }
 0x313   : > { %v1133_v13 = vpop.permute.xlu1 %1132 }
 0x361   : > { %v1065_v0 = vpop.f32.mrf.mxu1 }
 0x362   : > { %v1066_v1 = vadd.f32 %v1065_v0, %v3514_v63 }
 0x363   : > { %v2360_v2 = vpop.f32.mrf.mxu1 }
 0x364   : > { %v1072_v3 = vsel %vm1071_vm3, %v1066_v1, -inf }
 0x365   : > { %1073 = vmax.xlane.f32.xlu0 %v1072_v3  ;;  %v1068_v4 = vpop.f32.mrf.mxu1 }
 0x367   : > { %v2361_v5 = vpop.f32.mrf.mxu1 }
 0x37b   : > { %1134 = vrot.lane.b32.xlu0 %v3473_v42, %s3075_s2 }
 0x37f   : > { %1193 = vrot.lane.b32.xlu0 %v3499_v57, %s3075_s2 }
 0x383   : > { %1242 = vrot.lane.b32.xlu0 %v3473_v42, %s3076_s30 }
 0x387   : > { %1240 = vrot.lane.b32.xlu0 %v1016_v54, %s3076_s30 }
 0x3ee   : > { %v1074_v6 = vpop.xlane.xlu0 %1073 }
 0x3ef   : > { %v1075_v7 = vsub.f32 %v1066_v1, %v1074_v6 }
 0x3f1   : > { %v1076_v8 = vmul.f32 1.442695, %v1075_v7 }
 0x3f2   : > { %v1135_v10 = vpop.permute.xlu0 %1134 }
 0x3f3   : > { %2686 = vpow2.f32 %v1076_v8  ;;  %v1140_v11 = vsel %vm1024_vm1, %v1135_v10, 0 }
 0x3f6   : > { %v1194_v14 = vpop.permute.xlu0 %1193 }
 0x3fa   : > { %v1243_v29 = vpop.permute.xlu0 %1242 }
 0x3fb   : > { %v1248_v30 = vsel %vm1024_vm1, %v1243_v29, 0 }
 0x3fe   : > { %v1241_v32 = vpop.permute.xlu0 %1240 }
 0x400   : > { %v3525_v9 = vpop.eup %2686 }
 0x401   : > { %v1082_v12 = vpack.c.bf16 %v3525_v9, %v3525_v9 }
 0x403   : > { %2365 = vmatmul.mubr.msk.bf16.vlgmr.msra.gmra.mxu1 %vm1071_vm3, %v1082_v12 }
 0x404   : > { %2369 = vmatpush3.bf16.xpose.msra.mxu1 %v1140_v11  ;;  %2370 = vmatprep.mubr.msk.bf16.mxu1 %vm3074_vm0, %v3073_v38 }
 0x405   : > { %2374 = vmatprep.subr.bf16.mxu1 %v3073_v38 }
 0x40b   : > { %2371 = vmatmul.mubr.msk.bf16.vlgmr.msra.gmra.mxu1 %vm1024_vm1, %v1133_v13 }
 0x40c   : > { %2375 = vmatpush3.bf16.msra.mxu1 %v1194_v14  ;;  %2376 = vmatprep.mubr.msk.bf16.mxu1 %vm3074_vm0, %v3073_v38 }
 0x40d   : > { %2380 = vmatprep.subr.bf16.mxu1 %v3073_v38 }
 0x4c3   : > { %v3538_v15 = vpop.f32.mrf.mxu1 }
 0x4c5   : > { %v2366_v16 = vpop.f32.mrf.mxu1 }
 0x4c7   : > { %v1127_v17 = vpop.f32.mrf.mxu1 }
 0x4c8   : > { %v1078_v17 = vsel %vm1071_vm3, %v3525_v9, 0.0  ;;  %v2642_v9 = vld [vmem:[#allocation12 + $0x18] sm:$0xff]  }
 0x4c9   : > { %v2367_v18 = vpop.f32.mrf.mxu1 }
 0x4cb   : > { %v1176_v19 = vpop.f32.mrf.mxu1 }
 0x4cc   : > { %v1177_v20 = vadd.f32 %v1176_v19, %v3514_v63 }
 0x4cd   : > { %v2372_v21 = vpop.f32.mrf.mxu1 }
 0x4ce   : > { %v1182_v22 = vsel %vm1071_vm3, %v1177_v20, -inf  ;;  %v2639_v21 = vld [vmem:[#allocation12 + $0x30] sm:$0xff]  }
 0x4cf   : > { %1183 = vmax.xlane.f32.xlu1 %v1182_v22  ;;  %v1179_v23 = vpop.f32.mrf.mxu1  ;;  %v2640_v22 = vld [vmem:[#allocation12 + $0x28] sm:$0xff]  }
 0x4d0   : > { %v2641_v23 = vld [vmem:[#allocation12 + $0x20] sm:$0xff]  }
 0x4d1   : > { %v2373_v24 = vpop.f32.mrf.mxu1 }
 0x4d2   : > { %v2643_v24 = vld [vmem:[#allocation12 + $0x10] sm:$0xff]  }
 0x4e0   : > { %1301 = vrot.lane.b32.xlu1 %v3499_v57, %s3076_s30 }
 0x4e4   : > { %1350 = vrot.lane.b32.xlu1 %v3473_v42, %s3077_s10 }
 0x4e8   : > { %1348 = vrot.lane.b32.xlu1 %v1016_v54, %s3077_s10 }
 0x558   : > { %v1184_v25 = vpop.xlane.xlu1 %1183 }
 0x559   : > { %v1185_v26 = vsub.f32 %v1177_v20, %v1184_v25  ;;  %v2638_v20 = vld [vmem:[#allocation12 + $0x38] sm:$0xff]   ;;  %v2644_v25 = vld [vmem:[#allocation12 + $0x8] sm:$0xff]  }
 0x55a   : > { %2405 = vmatpush3.bf16.msra.mxu0 %v2638_v20  ;;  %v2679_v20 = vld [vmem:[#allocation15 + $0x18] sm:$0xff]  }
 0x55b   : > { %v1186_v27 = vmul.f32 1.442695, %v1185_v26  ;;  %2406 = vmatprep.subr.bf16.mxu0 %v3073_v38 }
 0x55c   : > { %v1302_v33 = vpop.permute.xlu1 %1301 }
 0x55d   : > { %2688 = vpow2.f32 %v1186_v27  ;;  %v2645_v27 = vld [vmem:[#allocation12] sm:$0xff]  }
 0x55e   : > { %2407 = vmatpush3.bf16.msra.mxu0 %v2639_v21  ;;  %v2680_v21 = vld [vmem:[#allocation15 + $0x50] sm:$0xff]  }
 0x55f   : > { %2408 = vmatprep.subr.bf16.mxu0 %v3073_v38 }
 0x560   : > { %v1351_v51 = vpop.permute.xlu1 %1350 }
 0x561   : > { %v1356_v52 = vsel %vm1024_vm1, %v1351_v51, 0  ;;  %v2646_v51 = vld [vmem:[#allocation14 + $0x70] ss:$8 sps:$4 sm:$0xff]  }
 0x562   : > { %2409 = vmatpush3.bf16.msra.mxu0 %v2640_v22  ;;  %v2681_v22 = vld [vmem:[#allocation15 + $0x10] sm:$0xff]  }
 0x563   : > { %2410 = vmatprep.subr.bf16.mxu0 %v3073_v38 }
 0x564   : > { %v1349_v54 = vpop.permute.xlu1 %1348 }
 0x566   : > { %2411 = vmatpush3.bf16.msra.mxu0 %v2641_v23 }
 0x567   : > { %2412 = vmatprep.subr.bf16.mxu0 %v3073_v38 }
 0x56a   : > { %v2689_v28 = vpop.eup %2688  ;;  %2413 = vmatpush3.bf16.msra.mxu0 %v2642_v9 }
 0x56b   : > { %v1192_v31 = vpack.c.bf16 %v2689_v28, %v2689_v28  ;;  %v1188_v45 = vsel %vm1071_vm3, %v2689_v28, 0.0  ;;  %2414 = vmatprep.subr.bf16.mxu0 %v3073_v38 }
 0x56d   : > { %2377 = vmatmul.mubr.msk.bf16.vlgmr.msra.gmra.mxu1 %vm1071_vm3, %v1192_v31 }
 0x56e   : > { %2381 = vmatpush3.bf16.xpose.msra.mxu1 %v1248_v30  ;;  %2382 = vmatprep.mubr.msk.bf16.mxu1 %vm3074_vm0, %v3073_v38 }
 0x56f   : > { %2386 = vmatprep.subr.bf16.mxu1 %v3073_v38  ;;  %2415 = vmatpush3.bf16.msra.mxu0 %v2643_v24 }
 0x570   : > { %2416 = vmatprep.subr.bf16.mxu0 %v3073_v38 }
 0x573   : > { %2417 = vmatpush3.bf16.msra.mxu0 %v2644_v25 }
 0x574   : > { %2418 = vmatprep.subr.bf16.mxu0 %v3073_v38 }
 0x575   : > { %2383 = vmatmul.mubr.msk.bf16.vlgmr.msra.gmra.mxu1 %vm1024_vm1, %v1241_v32 }
 0x576   : > { %2387 = vmatpush3.bf16.msra.mxu1 %v1302_v33  ;;  %2388 = vmatprep.mubr.msk.bf16.mxu1 %vm3074_vm0, %v3073_v38 }
 0x577   : > { %2392 = vmatprep.subr.bf16.mxu1 %v3073_v38  ;;  %2419 = vmatpush3.bf16.msra.mxu0 %v2645_v27 }
 0x62d   : > { %v3556_v34 = vpop.f32.mrf.mxu1 }
 0x62f   : > { %v2378_v35 = vpop.f32.mrf.mxu1 }
 0x631   : > { %v1236_v36 = vpop.f32.mrf.mxu1 }
 0x633   : > { %v2379_v37 = vpop.f32.mrf.mxu1 }
 0x635   : > { %v1284_v39 = vpop.f32.mrf.mxu1 }
 0x636   : > { %v1285_v40 = vadd.f32 %v1284_v39, %v3514_v63 }
 0x637   : > { %v2384_v41 = vpop.f32.mrf.mxu1 }
 0x638   : > { %v1290_v42 = vsel %vm1071_vm3, %v1285_v40, -inf }
 0x639   : > { %1291 = vmax.xlane.f32.xlu0 %v1290_v42  ;;  %v1287_v43 = vpop.f32.mrf.mxu1 }
 0x63b   : > { %v2385_v44 = vpop.f32.mrf.mxu1 }
 0x63c   : > { %v2226_v44 = vld [vmem:[%s3768_s17] ss:$0 sm:$0xff] }
 0x64f   : > { %1409 = vrot.lane.b32.xlu0 %v3499_v57, %s3077_s10 }
 0x66e   : > { %1189 = vadd.xlane.f32.xlu0 %v1188_v45 }
 0x6c2   : > { %v1292_v46 = vpop.xlane.xlu0 %1291 }
 0x6c3   : > { %v1293_v47 = vsub.f32 %v1285_v40, %v1292_v46 }
 0x6c5   : > { %v1294_v49 = vmul.f32 1.442695, %v1293_v47 }
 0x6c6   : > { %v1410_v55 = vpop.permute.xlu0 %1409 }
 0x6c7   : > { %2690 = vpow2.f32 %v1294_v49 }
 0x6d4   : > { %v2691_v50 = vpop.eup %2690 }
 0x6d5   : > { %v1300_v53 = vpack.c.bf16 %v2691_v50, %v2691_v50  ;;  %v1296_v5 = vsel %vm1071_vm3, %v2691_v50, 0.0 }
 0x6d7   : > { %2389 = vmatmul.mubr.msk.bf16.vlgmr.msra.gmra.mxu1 %vm1071_vm3, %v1300_v53  ;;  %v2651_v53 = vld [vmem:[#allocation14 + $0x64] ss:$8 sps:$4 sm:$0xff]  }
 0x6d8   : > { %2393 = vmatpush3.bf16.xpose.msra.mxu1 %v1356_v52  ;;  %2394 = vmatprep.mubr.msk.bf16.mxu1 %vm3074_vm0, %v3073_v38  ;;  %v2648_v52 = vld [vmem:[#allocation14 + $0x74] ss:$8 sps:$4 sm:$0xff]  }
 0x6d9   : > { %2398 = vmatprep.subr.bf16.mxu1 %v3073_v38 }
 0x6df   : > { %2395 = vmatmul.mubr.msk.bf16.vlgmr.msra.gmra.mxu1 %vm1024_vm1, %v1349_v54  ;;  %v2649_v54 = vld [vmem:[#allocation14 + $0x60] ss:$8 sps:$4 sm:$0xff]  }
 0x6e0   : > { %2399 = vmatpush3.bf16.msra.mxu1 %v1410_v55  ;;  %2400 = vmatprep.mubr.msk.bf16.mxu1 %vm3074_vm0, %v3073_v38 }
 0x6e1   : > { %1723 = vmatprep.subr.bf16.mxu1 %v2648_v52 }
 0x6f7   : > { %v1190_v14 = vpop.xlane.xlu0 %1189 }
 0x797   : > { %v1341_v56 = vpop.f32.mrf.mxu1 }
 0x799   : > { %v2390_v57 = vpop.f32.mrf.mxu1 }
 0x79b   : > { %v1344_v58 = vpop.f32.mrf.mxu1 }
 0x79d   : > { %v2391_v59 = vpop.f32.mrf.mxu1 }
 0x79e   : > { %v2654_v59 = vld [vmem:[#allocation14 + $0x54] ss:$8 sps:$4 sm:$0xff]  }
 0x79f   : > { %v1392_v62 = vpop.f32.mrf.mxu1 }
 0x7a0   : > { %v1393_v0 = vadd.f32 %v1392_v62, %v3514_v63  ;;  %v2652_v62 = vld [vmem:[#allocation14 + $0x50] ss:$8 sps:$4 sm:$0xff]  }
 0x7a1   : > { %v2396_v1 = vpop.f32.mrf.mxu1 }
 0x7a2   : > { %v1398_v2 = vsel %vm1071_vm3, %v1393_v0, -inf  ;;  %v2660_v1 = vld [vmem:[#allocation14 + $0x34] ss:$8 sps:$4 sm:$0xff]  }
 0x7a3   : > { %1399 = vmax.xlane.f32.xlu1 %v1398_v2  ;;  %v1395_v3 = vpop.f32.mrf.mxu1  ;;  %v2658_v2 = vld [vmem:[#allocation14 + $0x30] ss:$8 sps:$4 sm:$0xff]  }
 0x7a4   : > { %v3078_v3 = vmov 0  }
 0x7a5   : > { %v2397_v4 = vpop.f32.mrf.mxu1 }
 0x7a6   : > { %v2663_v4 = vld [vmem:[#allocation14 + $0x24] ss:$8 sps:$4 sm:$0xff]  }
 0x7a7   : > { %1297 = vadd.xlane.f32.xlu1 %v1296_v5  ;;  %v2661_v5 = vld [vmem:[#allocation14 + $0x20] ss:$8 sps:$4 sm:$0xff]  }
 0x82c   : > { %v1400_v6 = vpop.xlane.xlu1 %1399 }
 0x82d   : > { %v1401_v7 = vsub.f32 %v1393_v0, %v1400_v6  ;;  %v2657_v0 = vld [vmem:[#allocation14 + $0x44] ss:$8 sps:$4 sm:$0xff]   ;;  %v2666_v6 = vld [vmem:[#allocation14 + $0x14] ss:$8 sps:$4 sm:$0xff]  }
 0x82f   : > { %v1402_v8 = vmul.f32 1.442695, %v1401_v7  ;;  %v2664_v7 = vld [vmem:[#allocation14 + $0x10] ss:$8 sps:$4 sm:$0xff]  }
 0x830   : > { %v1298_v10 = vpop.xlane.xlu1 %1297 }
 0x831   : > { %2692 = vpow2.f32 %v1402_v8  ;;  %v2669_v8 = vld [vmem:[#allocation14 + $0x4] ss:$8 sps:$4 sm:$0xff]  }
 0x832   : > { %2694 = vrcp.f32 %v1298_v10  ;;  %v2667_v10 = vld [vmem:[#allocation14] ss:$8 sps:$4 sm:$0xff]  }
 0x833   : > { %2696 = vrcp.f32 %v1190_v14  ;;  %v2674_v14 = vld [vmem:[#allocation15 + $0x68] sm:$0xff]  }
 0x83e   : > { %v2693_v11 = vpop.eup %2692 }
 0x83f   : > { %v2695_v12 = vpop.eup %2694  ;;  %v1404_v13 = vsel %vm1071_vm3, %v2693_v11, 0.0  ;;  %v1408_v63 = vpack.c.bf16 %v2693_v11, %v2693_v11  ;;  %v2670_v11 = vld [vmem:[#allocation15 + $0x78] sm:$0xff]  }
 0x840   : > { %1405 = vadd.xlane.f32.xlu1 %v1404_v13  ;;  %v1347_v16 = vmul.f32 %v2695_v12, %v1341_v56  ;;  %v2697_v18 = vpop.eup %2696  ;;  %v2671_v12 = vld [vmem:[#allocation15 + $0x38] sm:$0xff]   ;;  %v2672_v13 = vld [vmem:[#allocation15 + $0x70] sm:$0xff]   ;;  %2314 = vmatprep.subr.bf16.mxu0 %v2670_v11 }
 0x841   : > { %2401 = vmatmul.mubr.msk.bf16.vlgmr.msra.gmra.mxu1 %vm1071_vm3, %v1408_v63  ;;  %v1239_v19 = vmul.f32 %v2697_v18, %v3556_v34  ;;  %v2673_v63 = vld [vmem:[#allocation15 + $0x30] sm:$0xff]   ;;  %v2677_v18 = vld [vmem:[#allocation15 + $0x20] sm:$0xff]  }
 0x842   : > { %1461 = vrot.lane.b32.xlu0 %v1347_v16, %s3076_s30  ;;  %1724 = vmatpush1.bf16.msra.mxu1 %v2646_v51  ;;  %v2675_v16 = vld [vmem:[#allocation15 + $0x28] sm:$0xff]   ;;  %v2253_v51 = vld [vmem:[%s3771_s8] ss:$0 sm:$0xff] }
 0x843   : > { %1725 = vmatprep.subr.bf16.mxu1 %v2651_v53  ;;  %1755 = vmatprep.mubr.bf16.mxu1 %v3078_v3 }
 0x844   : > { %1079 = vadd.xlane.f32.xlu1 %v1078_v17  ;;  %v2676_v17 = vld [vmem:[#allocation15 + $0x60] sm:$0xff]  }
 0x846   : > { %1726 = vmatpush1.bf16.msra.mxu1 %v2649_v54 }
 0x847   : > { %1727 = vmatprep.subr.bf16.mxu1 %v2654_v59 }
 0x84a   : > { %1728 = vmatpush1.bf16.msra.mxu1 %v2652_v62 }
 0x84b   : > { %1729 = vmatprep.subr.bf16.mxu1 %v2657_v0 }
 0x855   : > { %1457 = vrot.lane.b32.xlu1 %v1239_v19, %s3077_s10  ;;  %v2678_v19 = vld [vmem:[#allocation15 + $0x58] sm:$0xff]  }
 0x8b4   : > { %v1462_v39 = vpop.permute.xlu0 %1461 }
 0x8c9   : > { %v1406_v26 = vpop.xlane.xlu1 %1405 }
 0x8ca   : > { %2698 = vrcp.f32 %v1406_v26  ;;  %v2235_v26 = vld [vmem:[%s3769_s23] ss:$0 sm:$0xff]  ;;  %s1988_s23 = sshll.u32 %s717_s12, 4  ;;  %s1989_s23 = int_to_ptr.vmem [resolvable:$true] %s1988_s23 }
 0x8cb   : > { %s2918_s8 = scalar_lea.vmem %s1989_s23, 128 }
 0x8cc   : > { %p2919_p7 = scmp.ne.s32.totalorder %s1989_s23, %s2918_s8 }
 0x8cd   : > { %v1080_v34 = vpop.xlane.xlu1 %1079 }
 0x8ce   : > { %2700 = vrcp.f32 %v1080_v34  ;;  %v2684_v34 = vld [vmem:[#allocation15 + $0x40] sm:$0xff]   ;;  %p2920_p1 = pnand %p2919_p7, %p3778_p6 }
 0x8d0   : > { %p2921_p4 = pneg %p2920_p1 }
 0x8d1   : > { %v1458_v37 = vpop.permute.xlu1 %1457 }
 0x8d7   : > { %v2699_v28 = vpop.eup %2698 }
 0x8db   : > { %v2701_v35 = vpop.eup %2700 }
 0x8dc   : > { %v1130_v36 = vmul.f32 %v2701_v35, %v3538_v15  ;;  %v2685_v35 = vld [vmem:[#allocation15] sm:$0xff]  }
 0x8de   : > { %v1468_v38 = vsel %vm1024_vm1, %v1130_v36, %v1458_v37  ;;  %v1631_v36 = vld [vmem:[%s3770_s11] sm:$0x3]  ;;  %v1639_v37 = vsub.s32 1, %v3508_v60  ;;  %s3777_s11 = sld [smem:[#allocation49_spill]] }
 0x8df   : > { %v1470_v40 = vsel %vm1469_vm4, %v1468_v38, %v1462_v39  ;;  %v1636_v38 = vrot.slane %v1631_v36, %v901_v61 }
 0x8e0   : > { %v1640_v39 = vrot.slane %v1631_v36, %v1639_v37 }
 0x901   : > { %v1449_v29 = vpop.f32.mrf.mxu1 }
 0x902   : > { %v1455_v30 = vmul.f32 %v2699_v28, %v1449_v29  ;;  %v2236_v28 = vld [vmem:[#allocation8] ss:$0 sm:$0xff] }
 0x903   : > { %v2402_v31 = vpop.f32.mrf.mxu1 }
 0x904   : > { %1465 = vrot.lane.b32.xlu1 %v1455_v30, %s3075_s2  ;;  %s3773_s2 = sld [smem:[#allocation26_spill]] }
 0x905   : > { %v1452_v32 = vpop.f32.mrf.mxu1 }
 0x906   : > { %v2682_v32 = vld [vmem:[#allocation15 + $0x48] sm:$0xff]  }
 0x907   : > { %v2403_v33 = vpop.f32.mrf.mxu1 }
 0x908   : > { %v2683_v33 = vld [vmem:[#allocation15 + $0x8] sm:$0xff]  }
 0x90a   : > { %s1984_s16 = sadd.s32 %s3773_s2, %s2273_s0  ;;  %s2922_s2 = sshll.u32 %s3079_s24, 4  ;;  %s2923_s2 = int_to_ptr.vmem [resolvable:$false] %s2922_s2 }
 0x90b   : > { %s2274_s6 = sshll.u32 %s1984_s16, 7  ;;  %s2924_s0 = scalar_lea.vmem %s2923_s2, 256 }
 0x90c   : > { %s1986_s13 = scalar_lea.hbm %s3777_s11, %s2274_s6  ;;  %p2925_p3 = scmp.lt.s32.totalorder %s1989_s23, %s2923_s2 }
 0x90d   : > { %p2926_p11 = scmp.lt.s32.totalorder %s2924_s0, %s2918_s8 }
 0x90f   : > { %p2927_p13 = por %p2926_p11, %p2925_p3 }
 0x911   : > { %p2928_p5 = pnand %p2927_p13, %p2921_p4 }
 0x976   : > { %v1466_v41 = vpop.permute.xlu1 %1465 }
 0x977   : > { %v1472_v42 = vsel %vm1471_vm5, %v1470_v40, %v1466_v41 }
 0x978   : > { %v1473_v43 = vpack.c.bf16 %v1472_v42, %v1472_v42 }
 0x97a   : > { %2421 = vmatmul.mubr.bf16.vlgmr.msra.gmra.mxu0 %v1473_v43 }
 0x97b   : > { %2315 = vmatpush3.bf16.msra.mxu0 %v2671_v12 }
 0x97c   : > { %2316 = vmatprep.subr.bf16.mxu0 %v2672_v13 }
 0x97f   : > { %2317 = vmatpush3.bf16.msra.mxu0 %v2673_v63 }
 0x980   : > { %2318 = vmatprep.subr.bf16.mxu0 %v2674_v14 }
 0x983   : > { %2319 = vmatpush3.bf16.msra.mxu0 %v2675_v16 }
 0x984   : > { %2320 = vmatprep.subr.bf16.mxu0 %v2676_v17 }
 0x987   : > { %2321 = vmatpush3.bf16.msra.mxu0 %v2677_v18 }
 0x988   : > { %2322 = vmatprep.subr.bf16.mxu0 %v2678_v19 }
 0x98b   : > { %2323 = vmatpush3.bf16.msra.mxu0 %v2679_v20 }
 0x98c   : > { %2324 = vmatprep.subr.bf16.mxu0 %v2680_v21 }
 0x98f   : > { %2325 = vmatpush3.bf16.msra.mxu0 %v2681_v22 }
 0x990   : > { %2326 = vmatprep.subr.bf16.mxu0 %v2682_v32 }
 0x993   : > { %2327 = vmatpush3.bf16.msra.mxu0 %v2683_v33 }
 0x994   : > { %2328 = vmatprep.subr.bf16.mxu0 %v2684_v34 }
 0x997   : > { %2329 = vmatpush3.bf16.msra.mxu0 %v2685_v35 }
 0xa3a   : > { %v1579_v45 = vpop.f32.mrf.mxu0 }
 0xa3b   : > { %v1580_v46 = vadd.f32 %v2226_v44, %v1579_v45 }
 0xa3c   : > { %v2422_v47 = vpop.f32.mrf.mxu0 }
 0xa3d   : > { %v1585_v15 = vadd.f32 %v1580_v46, %v3484_v48  ;;  %v2655_v48 = vld [vmem:[#allocation14 + $0x40] ss:$8 sps:$4 sm:$0xff]  }
 0xa3e   : > { %v1582_v49 = vpop.f32.mrf.mxu0  ;;  %1730 = vmatpush1.bf16.msra.mxu1 %v2655_v48 }
 0xa3f   : > { %1588 = vadd.xlane.f32.xlu1 %v1585_v15  ;;  %1731 = vmatprep.subr.bf16.mxu1 %v2660_v1 }
 0xa40   : > { %v2423_v50 = vpop.f32.mrf.mxu0 }
 0xa42   : > { %1732 = vmatpush1.bf16.msra.mxu1 %v2658_v2  ;;  %v2270_v2 = vld [vmem:[%s3775_s14] ss:$0 sm:$0xff] }
 0xa43   : > { %1733 = vmatprep.subr.bf16.mxu1 %v2663_v4  ;;  %v2271_v4 = vld [vmem:[%s3776_s27] ss:$0 sm:$0xff] }
 0xa46   : > { %1734 = vmatpush1.bf16.msra.mxu1 %v2661_v5 }
 0xa47   : > { %1735 = vmatprep.subr.bf16.mxu1 %v2666_v6 }
 0xa4a   : > { %1736 = vmatpush1.bf16.msra.mxu1 %v2664_v7 }
 0xa4b   : > { %1737 = vmatprep.subr.bf16.mxu1 %v2669_v8 }
 0xa4e   : > { %1738 = vmatpush1.bf16.msra.mxu1 %v2667_v10 }
 0xac8   : > { %v1589_v55 = vpop.xlane.xlu1 %1588 }
 0xac9   : > { %v1591_v56 = vmul.f32 0.0078125, %v1589_v55 }
 0xacb   : > { %v1592_v57 = vsub.f32 %v1585_v15, %v1591_v56 }
 0xacd   : > { %v1593_v58 = vmul.f32 %v1592_v57, %v1592_v57 }
 0xacf   : > { %1594 = vadd.xlane.f32.xlu0 %v1593_v58 }
 0xb58   : > { %v1595_v23 = vpop.xlane.xlu0 %1594 }
 0xb59   : > { %v1596_v9 = vmul.f32 0.0078125, %v1595_v23 }
 0xb5b   : > { %v1597_v24 = vadd.f32 1e-05, %v1596_v9 }
 0xb5d   : > { %2702 = vrsqrt.f32 %v1597_v24 }
 0xb6a   : > { %v2703_v25 = vpop.eup %2702 }
 0xb6b   : > { %v1599_v27 = vmul.f32 %v2703_v25, %v1592_v57 }
 0xb6d   : > { %v1606_v29 = vmul.f32 %v2235_v26, %v1599_v27 }
 0xb6f   : > { %v1613_v30 = vadd.f32 %v2236_v28, %v1606_v29 }
 0xb71   : > { %v1614_v31 = vpack.c.bf16 %v1613_v30, %v1613_v30 }
 0xb73   : > { %1756 = vmatmul.mubr.bf16.vlgmr.msra.gmra.mxu1 %v1614_v31 }
 0xc33   : > { %v1757_v40 = vpop.f32.mrf.mxu1 }
 0xc34   : > { %v1758_v41 = vadd.f32 %v1757_v40, %v1636_v38 }
 0xc35   : > { %v1759_v42 = vpop.f32.mrf.mxu1 }
 0xc36   : > { %v1760_v43 = vadd.f32 %v1759_v42, %v1640_v39  ;;  %v1764_v44 = vmax.f32 %v1758_v41, 0.0 }
 0xc37   : > { %v1761_v45 = vpop.f32.mrf.mxu1 }
 0xc38   : > { %v1765_v46 = vmax.f32 %v1760_v43, 0.0  ;;  %v1766_v49 = vpack.c.bf16 %v1764_v44, %v1764_v44 }
 0xc39   : > { %v1762_v47 = vpop.f32.mrf.mxu1 }
 0xc3a   : > { %v1767_v15 = vpack.c.bf16 %v1765_v46, %v1765_v46 }
 0xc3c   : > { %1935 = vmatprep.mubr.bf16.mxu0 %v1767_v15 }
 0xc3d   : > { %1936 = vmatmul.mubr.bf16.vlgmr.msra.gmra.mxu0 %v1766_v49 }
 0xcfd   : > { %v2330_v50 = vpop.f32.mrf.mxu0 }
 0xcff   : > { %v2331_v60 = vpop.f32.mrf.mxu0 }
 0xd00   : > { %v2332_v61 = vadd.f32 %v2331_v60, %v2330_v50 }
 0xd01   : > { %v2333_v52 = vpop.f32.mrf.mxu0 }
 0xd02   : > { %v1938_v53 = vadd.f32 %v2332_v61, %v2253_v51 }
 0xd03   : > { %v2334_v54 = vpop.f32.mrf.mxu0 }
 0xd04   : > { %v1943_v55 = vadd.f32 %v1938_v53, %v1613_v30 }
 0xd06   : > { %1946 = vadd.xlane.f32.xlu1 %v1943_v55 }
 0xd8f   : > { %v1947_v56 = vpop.xlane.xlu1 %1946 }
 0xd90   : > { %v1948_v57 = vmul.f32 0.0078125, %v1947_v56 }
 0xd92   : > { %v1949_v58 = vsub.f32 %v1943_v55, %v1948_v57 }
 0xd94   : > { %v1950_v59 = vmul.f32 %v1949_v58, %v1949_v58 }
 0xd96   : > { %1951 = vadd.xlane.f32.xlu1 %v1950_v59 }
 0xe1f   : > { %v1952_v62 = vpop.xlane.xlu1 %1951 }
 0xe20   : > { %v1953_v48 = vmul.f32 0.0078125, %v1952_v62 }
 0xe22   : > { %v1954_v0 = vadd.f32 1e-05, %v1953_v48 }
 0xe24   : > { %2704 = vrsqrt.f32 %v1954_v0 }
 0xe31   : > { %v2705_v1 = vpop.eup %2704 }
 0xe32   : > { %v1956_v3 = vmul.f32 %v2705_v1, %v1949_v58 }
 0xe34   : > { %v1963_v5 = vmul.f32 %v2270_v2, %v1956_v3 }
 0xe36   : > { %v1970_v6 = vadd.f32 %v2271_v4, %v1963_v5 }
 0xe38   : > { %1971 = vst [vmem:[%s717_s12] sm:$0xff] %v1970_v6 }
 0xe39   : > { %2931 = shalt.err (!%p2928_p5)
}
 0xe3a   : > { %s2932_s16 = scalar_lea.hbm %s1986_s13, 128  ;;  %s2936_s12 = scalar_lea.hbm %s3777_s11, 512 }
 0xe3b   : > { %p2933_p10 = scmp.ne.s32.totalorder %s1986_s13, %s2932_s16  ;;  %p2937_p12 = scmp.lt.s32.totalorder %s1986_s13, %s3777_s11 }
 0xe3c   : > { %p2938_p0 = scmp.lt.s32.totalorder %s2936_s12, %s2932_s16 }
 0xe3d   : > { %p2934_p9 = pnand %p2933_p10, %p3778_p6 }
 0xe3e   : > { %p2939_p2 = por %p2938_p0, %p2937_p12 }
 0xe3f   : > { %p2935_p8 = pneg %p2934_p9 }
 0xe41   : > { %p2940_p7 = pnand %p2939_p2, %p2935_p8 }
 0xe43   : > { %2943 = shalt.err (!%p2940_p7)
}
 0xe44   : > { %2452 = dma.vmem_to_hbm [thread:$0]  (%p3778_p6), %s1989_s23, 128, %s1986_s13, %s1973_s15  }
 0xe45 PF: > { %s3779_s14 = sld [smem:[#allocation25_spill]]  ;;  %p2497_p1 = scmp.ge.s32.totalorder %s3058_s1, 2 }
 0xe46   : > { %s3780_s7 = sld [smem:[#allocation31_spill]] }
 0xe4b   : > { %s2000_s17 = sand.u32 1, %s3779_s14  }
 0xe4c   : > { %p3781_p4 = scmp.ne.s32.totalorder %s3780_s7, 0  ;;  %s2001_s27 = scalar_lea.sflag [#allocation5], %s2000_s17 }
 0xe4e   : > { %p2481_p3 = pnand %p2497_p1, %p3781_p4 }
 0xe50   : > { %p2482_p11 = pneg %p2481_p3 }
 0xe52   : > { %3013 = dma.done.wait (%p2482_p11), %s2001_s27, 128  }
 0xe53   : > { %3015 = vsyncadd (%p2482_p11), %s2001_s27, 4294967168  ;;  %s39_s1 = sadd.s32 1, %s3058_s1   ;;  %s3782_s9 = sld [smem:[#allocation28_spill]] }
 0xe54   : > { %p36_p13 = scmp.ge.s32.totalorder %s39_s1, 6   ;;  %s3783_s6 = sld [smem:[#allocation29_spill]] }
 0xe55   : > { %s3784_s24 = smov %s3022_s25  ;;  %s3785_s25 = smov %s3026_s26 }
 0xe56   : > { %s3786_s26 = smov %s3391_s5  ;;  %s3787_s27 = smov %s3034_s28 }
 0xe57   : > { %s3788_s28 = smov %s3038_s29  ;;  %s3789_s29 = smov %s3388_s4 }
 0xe58   : > { %s3790_s0 = smov %s3050_s18  ;;  %s3791_s30 = smov %s3054_s19 }
 0xe59   : > { %s3792_s18 = smov %s3782_s9  ;;  %38 = sbr.rel (!%p36_p13) target bundleno = 33 (0x21), region = 177 }
 0xe5a   : > { %s3793_s19 = smov %s3783_s6 }
 0xe5e   :  { %2006 = vsyncpa [#allocation4], 1 }
 0xe5f   :  { %2008 = vsyncpa [#allocation4 + $0x1], 1 }
 0xe60   :  { %2009 = vsyncpa [#allocation7], 1 }
 0xe61   :  { %2011 = vsyncpa [#allocation7 + $0x1], 1 }
 0xe62   :  { %2012 = vsyncpa [#allocation10], 1 }
 0xe63   :  { %2013 = vsyncpa [#allocation13], 1 }
 0xe64   :  { %2014 = vsyncpa [#allocation16], 1 }
 0xe65   :  { %2015 = vsyncpa [#allocation5], 1 }
 0xe66   :  { %2017 = vsyncpa [#allocation5 + $0x1], 1 }

</bundles_post_ra>
